<compile_context>
chip_gen: v7x
topology: tpu7x:2x2x1
jax: 0.10.0
libtpu: 0.0.40
codegen_flags: <defaults>
</compile_context>

<pallas_src>
import jax
import jax.numpy as jnp
from jax.experimental import pallas as pl
from jax.experimental.pallas import tpu as pltpu

C_X = 64          # model channels (PyTorch default 768, shrunk for the test)
NUM_HEAD = 4      # (PyTorch default 16, shrunk; qkv_dim = c_x // num_head)
QKV_DIM = C_X // NUM_HEAD
LN_EPS = 1e-5     # torch.nn.LayerNorm default eps


def _self_attention_kernel(x_ref, mask_ref, pair_ref,
                           ln_w_ref, ln_b_ref,
                           w_qkvg_ref, b_qkvg_ref, wo_ref,
                           o_ref):
    # Per-batch block:
    #   x_ref: (N, C) f32   mask_ref: (1, N) bf16   pair_ref: (H, N, N) bf16
    #   w_qkvg_ref: (C, 4C) bf16, s-major [Q|K|V|G] fused weight (Q pre-scaled)
    #   b_qkvg_ref: (1, 4C) f32 fused bias (only Q part nonzero, pre-scaled)
    #   wo_ref: (C, C) bf16
    H, D, C = NUM_HEAD, QKV_DIM, C_X
    N = x_ref.shape[0]

    x = x_ref[...].astype(jnp.float32)

    # ---- LayerNorm (AdaptiveLayerNorm, use_single_cond=False), f32 ----
    mean = jnp.mean(x, axis=-1, keepdims=True)
    var = jnp.mean(jnp.square(x - mean), axis=-1, keepdims=True)
    xn = (x - mean) * jax.lax.rsqrt(var + LN_EPS)
    xn = xn * ln_w_ref[...] + ln_b_ref[...]

    # ---- fused Q|K|V|G projection: one bf16 MXU pass, f32 accumulate ----
    qkvg = jnp.dot(xn.astype(jnp.bfloat16), w_qkvg_ref[...],
                   preferred_element_type=jnp.float32)
    qkvg = qkvg + b_qkvg_ref[...]                          # (N, 4C) f32

    # s-major layout -> four contiguous 64-lane slices (coupled to wrapper fusion)
    q = qkvg[:, 0 * C:1 * C]          # already scaled by 1/sqrt(D)
    k = qkvg[:, 1 * C:2 * C]
    v = qkvg[:, 2 * C:3 * C]
    g = qkvg[:, 3 * C:4 * C]          # gate pre-activation, stays lane-dense (N, C)

    def split_heads(t):               # (N, C) -> (H, N, D), one lane-aware relayout
        return pltpu.einshape('nhd->hnd', t.reshape(N, H, D))

    qh = split_heads(q.astype(jnp.bfloat16))
    kh = split_heads(k.astype(jnp.bfloat16))
    vh = split_heads(v.astype(jnp.bfloat16))

    # ---- all-head attention logits in one batched MXU pass ----
    logits = jnp.einsum('hqd,hkd->hqk', qh, kh,
                        preferred_element_type=jnp.float32)   # (H, N, N) f32

    # mask bias + pair logits added once, in f32
    mask = mask_ref[...].astype(jnp.float32)                  # (1, N)
    bias = 1e9 * (mask - 1.0)                                 # (1, N)
    logits = logits + pair_ref[...].astype(jnp.float32) + bias[None, :, :]

    # ---- softmax in f32: explicit max/exp/sum, EUP approx reciprocal ----
    m = jnp.max(logits, axis=-1, keepdims=True)
    p = jnp.exp(logits - m)
    denom = jnp.sum(p, axis=-1, keepdims=True)
    p = p * pl.reciprocal(denom, approx=True)

    # ---- batched PV, merge heads, gate on merged tensor, output projection ----
    pv = jnp.einsum('hqk,hkd->hqd', p.astype(jnp.bfloat16), vh,
                    preferred_element_type=jnp.float32)       # (H, N, D) f32

    wa = pltpu.einshape('hnd->nhd', pv).reshape(N, C)         # head merge, (N, C)
    wa = wa * jax.nn.sigmoid(g)                               # gating_query gate

    out = jnp.dot(wa.astype(jnp.bfloat16), wo_ref[...],
                  preferred_element_type=jnp.float32)         # (N, C)
    o_ref[...] = out.astype(o_ref.dtype)


def fuse_self_attention_params(params):
    """One-time weight fusion (hoisted out of the per-call path).

    Fused layout is s-major / head-minor: columns [Q | K | V | G], each block C
    wide in the module's native (head-major) column order.  The 1/sqrt(D) query
    scale is folded into the Q columns and the q-bias.  The kernel's
    `qkvg[:, s*C:(s+1)*C]` slicing depends on this ordering.
    """
    C = C_X
    scale = QKV_DIM ** -0.5
    w_qkvg = jnp.concatenate(
        [params["wq"] * scale, params["wk"], params["wv"], params["wg"]],
        axis=1).astype(jnp.bfloat16)                           # (C, 4C)
    b_qkvg = jnp.concatenate(
        [params["bq"].reshape(1, C) * scale,
         jnp.zeros((1, 3 * C), jnp.float32)],
        axis=1).astype(jnp.float32)                            # (1, 4C)
    return {
        "ln_w": params["ln_w"].reshape(1, C).astype(jnp.float32),
        "ln_b": params["ln_b"].reshape(1, C).astype(jnp.float32),
        "w_qkvg": w_qkvg,
        "b_qkvg": b_qkvg,
        "wo": params["wo"].astype(jnp.bfloat16),
    }


def self_attention_pallas(x, mask, pair_logits, fused):
    B, N, C = x.shape
    H = NUM_HEAD
    assert C == C_X and fused["w_qkvg"].shape == (C, 4 * C)

    # bf16 streaming of the dominant HBM traffic (pair_logits) + mask; additive
    # bias / softmax math stays f32 inside the kernel.
    mask3 = mask.reshape(B, 1, N).astype(jnp.bfloat16)
    pair_bf16 = pair_logits.astype(jnp.bfloat16)

    def _shared(shape):
        nd = len(shape)
        return pl.BlockSpec(shape, lambda b, _n=nd: (0,) * _n)

    grid_spec = pltpu.PrefetchScalarGridSpec(
        num_scalar_prefetch=0,
        grid=(B,),
        in_specs=[
            pl.BlockSpec((None, N, C), lambda b: (b, 0, 0)),        # x
            pl.BlockSpec((None, 1, N), lambda b: (b, 0, 0)),        # mask
            pl.BlockSpec((None, H, N, N), lambda b: (b, 0, 0, 0)),  # pair_logits
            _shared((1, C)), _shared((1, C)),                       # ln_w, ln_b
            _shared((C, 4 * C)), _shared((1, 4 * C)),               # fused W, fused b
            _shared((C, C)),                                        # Wo
        ],
        out_specs=pl.BlockSpec((None, N, C), lambda b: (b, 0, 0)),
    )

    return pl.pallas_call(
        _self_attention_kernel,
        out_shape=jax.ShapeDtypeStruct((B, N, C), x.dtype),
        grid_spec=grid_spec,
        compiler_params=pltpu.CompilerParams(
            dimension_semantics=("parallel",),
            vmem_limit_bytes=32 * 1024 * 1024),
    )(x, mask3, pair_bf16, fused["ln_w"], fused["ln_b"],
      fused["w_qkvg"], fused["b_qkvg"], fused["wo"])


def self_attention_ref(x, mask, pair_logits, params):
    """Pure-JAX f32 reference for correctness checking."""
    B, N, C = x.shape
    H, D = NUM_HEAD, QKV_DIM
    mean = x.mean(-1, keepdims=True)
    var = jnp.square(x - mean).mean(-1, keepdims=True)
    xn = (x - mean) / jnp.sqrt(var + LN_EPS) * params["ln_w"] + params["ln_b"]
    q = xn @ params["wq"] + params["bq"]
    k = xn @ params["wk"]
    v = xn @ params["wv"]
    gate = jax.nn.sigmoid(xn @ params["wg"])
    qh = q.reshape(B, N, H, D) * (D ** -0.5)
    kh = k.reshape(B, N, H, D)
    vh = v.reshape(B, N, H, D)
    logits = jnp.einsum("bqhd,bkhd->bhqk", qh, kh)
    logits = logits + (1e9 * (mask - 1.0))[:, None, None, :]
    logits = logits + pair_logits
    w = jax.nn.softmax(logits, axis=-1)
    wa = jnp.einsum("bhqk,bkhd->bqhd", w, vh).reshape(B, N, C)
    wa = wa * gate
    return wa @ params["wo"]


if __name__ == "__main__":
    B, N, C = 2, 32, C_X

    key = jax.random.PRNGKey(0)
    ks = jax.random.split(key, 12)

    # Deterministic synthetic parameters (shapes as implied by the module's __init__).
    params = {
        "ln_w": 1.0 + 0.1 * jax.random.normal(ks[0], (1, C), jnp.float32),
        "ln_b": 0.1 * jax.random.normal(ks[1], (1, C), jnp.float32),
        "wq": 0.05 * jax.random.normal(ks[2], (C, C), jnp.float32),
        "bq": 0.05 * jax.random.normal(ks[3], (1, C), jnp.float32),
        "wk": 0.05 * jax.random.normal(ks[4], (C, C), jnp.float32),
        "wv": 0.05 * jax.random.normal(ks[5], (C, C), jnp.float32),
        "wg": 0.05 * jax.random.normal(ks[6], (C, C), jnp.float32),
        "wo": 0.05 * jax.random.normal(ks[7], (C, C), jnp.float32),
    }

    x = jax.random.normal(ks[8], (B, N, C), jnp.float32)
    # mask: first sample has 24 valid tokens, second is fully valid
    lengths = jnp.array([[24], [32]], jnp.int32)
    mask = (jnp.arange(N)[None, :] < lengths).astype(jnp.float32)          # (B, N)
    pair_logits = 0.1 * jax.random.normal(ks[9], (B, NUM_HEAD, N, N), jnp.float32)

    # One-time weight fusion (init-time, not per forward).
    fused = jax.tree_util.tree_map(jax.block_until_ready,
                                   fuse_self_attention_params(params))

    out = self_attention_pallas(x, mask, pair_logits, fused)
    out = jax.block_until_ready(out)

    ref = self_attention_ref(x, mask, pair_logits, params)
    assert out.shape == (B, N, C) and out.dtype == jnp.float32
    # bf16 MXU feeds, bf16-streamed pair_logits and approx reciprocal vs f32
    # reference -> slightly loosened tolerance.
    assert jnp.allclose(out, ref, atol=1e-2, rtol=1e-2), (
        f"max abs err {jnp.max(jnp.abs(out - ref))}")

    print("KERNEL_OK")
</pallas_src>

<mosaic_0001>
module attributes {stable_mosaic.version = 11 : i64} {
  func.func @_self_attention_kernel(%arg0: i32, %arg1: memref<1x32x64xf32, #tpu.memory_space<vmem>>, %arg2: memref<1x1x32xbf16, #tpu.memory_space<vmem>>, %arg3: memref<1x4x32x32xbf16, #tpu.memory_space<vmem>>, %arg4: memref<1x64xf32, #tpu.memory_space<vmem>>, %arg5: memref<1x64xf32, #tpu.memory_space<vmem>>, %arg6: memref<64x256xbf16, #tpu.memory_space<vmem>>, %arg7: memref<1x256xf32, #tpu.memory_space<vmem>>, %arg8: memref<64x64xbf16, #tpu.memory_space<vmem>>, %arg9: memref<1x32x64xf32, #tpu.memory_space<vmem>>) attributes {dimension_semantics = [#tpu.dimension_semantics<parallel>], iteration_bounds = array<i64: 2>, scalar_prefetch = 0 : i64, scratch_operands = 0 : i64, tpu.core_type = #tpu.core_type<tc>, window_params = [{transform_indices = @transform_0, window_bounds = array<i64: 1, 32, 64>}, {transform_indices = @transform_1, window_bounds = array<i64: 1, 1, 32>}, {transform_indices = @transform_2, window_bounds = array<i64: 1, 4, 32, 32>}, {pipeline_mode = #tpu.pipeline_mode<synchronous>, transform_indices = @transform_3, window_bounds = array<i64: 1, 64>}, {pipeline_mode = #tpu.pipeline_mode<synchronous>, transform_indices = @transform_4, window_bounds = array<i64: 1, 64>}, {pipeline_mode = #tpu.pipeline_mode<synchronous>, transform_indices = @transform_5, window_bounds = array<i64: 64, 256>}, {pipeline_mode = #tpu.pipeline_mode<synchronous>, transform_indices = @transform_6, window_bounds = array<i64: 1, 256>}, {pipeline_mode = #tpu.pipeline_mode<synchronous>, transform_indices = @transform_7, window_bounds = array<i64: 64, 64>}, {transform_indices = @transform_8, window_bounds = array<i64: 1, 32, 64>}]} {
    %c0 = arith.constant 0 : index
    %c0_0 = arith.constant 0 : index
    %c0_1 = arith.constant 0 : index
    %0 = vector.load %arg1[%c0, %c0_0, %c0_1] : memref<1x32x64xf32, #tpu.memory_space<vmem>>, vector<1x32x64xf32>
    %1 = vector.shape_cast %0 : vector<1x32x64xf32> to vector<32x64xf32>
    %cst = arith.constant dense<0.000000e+00> : vector<32xf32>
    %2 = vector.multi_reduction <add>, %1, %cst [1] : vector<32x64xf32> to vector<32xf32>
    %3 = vector.shape_cast %2 : vector<32xf32> to vector<32x1xf32>
    %cst_2 = arith.constant 6.400000e+01 : f32
    %4 = vector.broadcast %cst_2 : f32 to vector<32x1xf32>
    %5 = arith.divf %3, %4 : vector<32x1xf32>
    %6 = vector.broadcast %5 : vector<32x1xf32> to vector<32x64xf32>
    %7 = arith.subf %1, %6 : vector<32x64xf32>
    %8 = arith.mulf %7, %7 : vector<32x64xf32>
    %cst_3 = arith.constant dense<0.000000e+00> : vector<32xf32>
    %9 = vector.multi_reduction <add>, %8, %cst_3 [1] : vector<32x64xf32> to vector<32xf32>
    %10 = vector.shape_cast %9 : vector<32xf32> to vector<32x1xf32>
    %cst_4 = arith.constant 6.400000e+01 : f32
    %11 = vector.broadcast %cst_4 : f32 to vector<32x1xf32>
    %12 = arith.divf %10, %11 : vector<32x1xf32>
    %13 = vector.broadcast %5 : vector<32x1xf32> to vector<32x64xf32>
    %14 = arith.subf %1, %13 : vector<32x64xf32>
    %cst_5 = arith.constant 9.99999974E-6 : f32
    %15 = vector.broadcast %cst_5 : f32 to vector<32x1xf32>
    %16 = arith.addf %12, %15 : vector<32x1xf32>
    %17 = math.rsqrt %16 : vector<32x1xf32>
    %18 = vector.broadcast %17 : vector<32x1xf32> to vector<32x64xf32>
    %19 = arith.mulf %14, %18 : vector<32x64xf32>
    %c0_6 = arith.constant 0 : index
    %c0_7 = arith.constant 0 : index
    %20 = vector.load %arg4[%c0_6, %c0_7] : memref<1x64xf32, #tpu.memory_space<vmem>>, vector<1x64xf32>
    %21 = vector.broadcast %20 : vector<1x64xf32> to vector<32x64xf32>
    %22 = arith.mulf %19, %21 : vector<32x64xf32>
    %c0_8 = arith.constant 0 : index
    %c0_9 = arith.constant 0 : index
    %23 = vector.load %arg5[%c0_8, %c0_9] : memref<1x64xf32, #tpu.memory_space<vmem>>, vector<1x64xf32>
    %24 = vector.broadcast %23 : vector<1x64xf32> to vector<32x64xf32>
    %25 = arith.addf %22, %24 : vector<32x64xf32>
    %26 = arith.truncf %25 : vector<32x64xf32> to vector<32x64xbf16>
    %c0_10 = arith.constant 0 : index
    %c0_11 = arith.constant 0 : index
    %27 = vector.load %arg6[%c0_10, %c0_11] : memref<64x256xbf16, #tpu.memory_space<vmem>>, vector<64x256xbf16>
    %cst_12 = arith.constant dense<0.000000e+00> : vector<32x256xf32>
    %28 = tpu.matmul %26, %27, %cst_12 {dimension_numbers = #tpu.dot_dimension_numbers<[1], [0], [0], [1], [0, 0, 1, 1], [], []>} : vector<32x64xbf16>, vector<64x256xbf16>, vector<32x256xf32> -> vector<32x256xf32>
    %c0_13 = arith.constant 0 : index
    %c0_14 = arith.constant 0 : index
    %29 = vector.load %arg7[%c0_13, %c0_14] : memref<1x256xf32, #tpu.memory_space<vmem>>, vector<1x256xf32>
    %30 = vector.broadcast %29 : vector<1x256xf32> to vector<32x256xf32>
    %31 = arith.addf %28, %30 : vector<32x256xf32>
    %32 = vector.extract_strided_slice %31 {offsets = [0, 0], sizes = [32, 64], strides = [1, 1]} : vector<32x256xf32> to vector<32x64xf32>
    %33 = vector.extract_strided_slice %31 {offsets = [0, 64], sizes = [32, 64], strides = [1, 1]} : vector<32x256xf32> to vector<32x64xf32>
    %34 = vector.extract_strided_slice %31 {offsets = [0, 128], sizes = [32, 64], strides = [1, 1]} : vector<32x256xf32> to vector<32x64xf32>
    %35 = vector.extract_strided_slice %31 {offsets = [0, 192], sizes = [32, 64], strides = [1, 1]} : vector<32x256xf32> to vector<32x64xf32>
    %36 = arith.truncf %32 : vector<32x64xf32> to vector<32x64xbf16>
    %37 = vector.shape_cast %36 : vector<32x64xbf16> to vector<32x4x16xbf16>
    %38 = tpu.transpose %37, [1, 0, 2] : vector<32x4x16xbf16> -> vector<4x32x16xbf16>
    %39 = arith.truncf %33 : vector<32x64xf32> to vector<32x64xbf16>
    %40 = vector.shape_cast %39 : vector<32x64xbf16> to vector<32x4x16xbf16>
    %41 = tpu.transpose %40, [1, 0, 2] : vector<32x4x16xbf16> -> vector<4x32x16xbf16>
    %42 = arith.truncf %34 : vector<32x64xf32> to vector<32x64xbf16>
    %43 = vector.shape_cast %42 : vector<32x64xbf16> to vector<32x4x16xbf16>
    %44 = tpu.transpose %43, [1, 0, 2] : vector<32x4x16xbf16> -> vector<4x32x16xbf16>
    "tpu.trace_start"() <{level = 10 : i32, message = "hqd,hkd->hqk"}> : () -> ()
    %cst_15 = arith.constant dense<0.000000e+00> : vector<4x32x32xf32>
    %45 = tpu.matmul %38, %41, %cst_15 {dimension_numbers = #tpu.dot_dimension_numbers<[2], [2], [1], [1], [0, 0, 0, 1, 1, 1], [0], [0]>} : vector<4x32x16xbf16>, vector<4x32x16xbf16>, vector<4x32x32xf32> -> vector<4x32x32xf32>
    "tpu.trace_stop"() : () -> ()
    %c0_16 = arith.constant 0 : index
    %c0_17 = arith.constant 0 : index
    %c0_18 = arith.constant 0 : index
    %46 = vector.load %arg2[%c0_16, %c0_17, %c0_18] : memref<1x1x32xbf16, #tpu.memory_space<vmem>>, vector<1x1x32xbf16>
    %47 = vector.shape_cast %46 : vector<1x1x32xbf16> to vector<1x32xbf16>
    %48 = arith.extf %47 : vector<1x32xbf16> to vector<1x32xf32>
    %cst_19 = arith.constant 1.000000e+00 : f32
    %49 = vector.broadcast %cst_19 : f32 to vector<1x32xf32>
    %50 = arith.subf %48, %49 : vector<1x32xf32>
    %cst_20 = arith.constant 1.000000e+09 : f32
    %51 = vector.broadcast %cst_20 : f32 to vector<1x32xf32>
    %52 = arith.mulf %51, %50 : vector<1x32xf32>
    %c0_21 = arith.constant 0 : index
    %c0_22 = arith.constant 0 : index
    %c0_23 = arith.constant 0 : index
    %c0_24 = arith.constant 0 : index
    %53 = vector.load %arg3[%c0_21, %c0_22, %c0_23, %c0_24] : memref<1x4x32x32xbf16, #tpu.memory_space<vmem>>, vector<1x4x32x32xbf16>
    %54 = vector.shape_cast %53 : vector<1x4x32x32xbf16> to vector<4x32x32xbf16>
    %55 = arith.extf %54 : vector<4x32x32xbf16> to vector<4x32x32xf32>
    %56 = arith.addf %45, %55 : vector<4x32x32xf32>
    %57 = vector.shape_cast %52 : vector<1x32xf32> to vector<1x1x32xf32>
    %58 = vector.broadcast %57 : vector<1x1x32xf32> to vector<4x32x32xf32>
    %59 = arith.addf %56, %58 : vector<4x32x32xf32>
    %cst_25 = arith.constant dense<0xFF800000> : vector<4x32xf32>
    %60 = vector.multi_reduction <maximumf>, %59, %cst_25 [2] : vector<4x32x32xf32> to vector<4x32xf32>
    %61 = vector.shape_cast %60 : vector<4x32xf32> to vector<4x32x1xf32>
    %62 = vector.broadcast %61 : vector<4x32x1xf32> to vector<4x32x32xf32>
    %63 = arith.subf %59, %62 : vector<4x32x32xf32>
    %64 = math.exp %63 : vector<4x32x32xf32>
    %cst_26 = arith.constant dense<0.000000e+00> : vector<4x32xf32>
    %65 = vector.multi_reduction <add>, %64, %cst_26 [2] : vector<4x32x32xf32> to vector<4x32xf32>
    %66 = vector.shape_cast %65 : vector<4x32xf32> to vector<4x32x1xf32>
    %67 = tpu.reciprocal %66 {approx = true} : vector<4x32x1xf32> -> vector<4x32x1xf32>
    %68 = vector.broadcast %67 : vector<4x32x1xf32> to vector<4x32x32xf32>
    %69 = arith.mulf %64, %68 : vector<4x32x32xf32>
    %70 = arith.truncf %69 : vector<4x32x32xf32> to vector<4x32x32xbf16>
    "tpu.trace_start"() <{level = 10 : i32, message = "hqk,hkd->hqd"}> : () -> ()
    %cst_27 = arith.constant dense<0.000000e+00> : vector<4x32x16xf32>
    %71 = tpu.matmul %70, %44, %cst_27 {dimension_numbers = #tpu.dot_dimension_numbers<[2], [1], [1], [2], [0, 0, 0, 1, 1, 2], [0], [0]>} : vector<4x32x32xbf16>, vector<4x32x16xbf16>, vector<4x32x16xf32> -> vector<4x32x16xf32>
    "tpu.trace_stop"() : () -> ()
    %72 = tpu.transpose %71, [1, 0, 2] : vector<4x32x16xf32> -> vector<32x4x16xf32>
    %73 = vector.shape_cast %72 : vector<32x4x16xf32> to vector<32x64xf32>
    %74 = arith.negf %35 : vector<32x64xf32>
    %75 = math.exp %74 : vector<32x64xf32>
    %cst_28 = arith.constant 1.000000e+00 : f32
    %76 = vector.broadcast %cst_28 : f32 to vector<32x64xf32>
    %77 = arith.addf %76, %75 : vector<32x64xf32>
    %78 = arith.divf %76, %77 : vector<32x64xf32>
    %79 = arith.mulf %73, %78 : vector<32x64xf32>
    %80 = arith.truncf %79 : vector<32x64xf32> to vector<32x64xbf16>
    %c0_29 = arith.constant 0 : index
    %c0_30 = arith.constant 0 : index
    %81 = vector.load %arg8[%c0_29, %c0_30] : memref<64x64xbf16, #tpu.memory_space<vmem>>, vector<64x64xbf16>
    %cst_31 = arith.constant dense<0.000000e+00> : vector<32x64xf32>
    %82 = tpu.matmul %80, %81, %cst_31 {dimension_numbers = #tpu.dot_dimension_numbers<[1], [0], [0], [1], [0, 0, 1, 1], [], []>} : vector<32x64xbf16>, vector<64x64xbf16>, vector<32x64xf32> -> vector<32x64xf32>
    %c0_32 = arith.constant 0 : index
    %c0_33 = arith.constant 0 : index
    %c0_34 = arith.constant 0 : index
    %83 = vector.load %arg9[%c0_32, %c0_33, %c0_34] : memref<1x32x64xf32, #tpu.memory_space<vmem>>, vector<1x32x64xf32>
    %84 = vector.shape_cast %83 : vector<1x32x64xf32> to vector<32x64xf32>
    %85 = vector.shape_cast %82 : vector<32x64xf32> to vector<1x32x64xf32>
    tpu.vector_store %arg9[%c0_32, %c0_33, %c0_34], %85 {strides = array<i32>} : memref<1x32x64xf32, #tpu.memory_space<vmem>>, vector<1x32x64xf32>,
    return
  }
  func.func @transform_0(%arg0: i32) -> (i32, i32, i32) {
    %c0_i32 = arith.constant 0 : i32
    %c0_i32_0 = arith.constant 0 : i32
    %c0_i32_1 = arith.constant 0 : i32
    return %arg0, %c0_i32, %c0_i32_0 : i32, i32, i32
  }
  func.func @transform_1(%arg0: i32) -> (i32, i32, i32) {
    %c0_i32 = arith.constant 0 : i32
    %c0_i32_0 = arith.constant 0 : i32
    %c0_i32_1 = arith.constant 0 : i32
    return %arg0, %c0_i32, %c0_i32_0 : i32, i32, i32
  }
  func.func @transform_2(%arg0: i32) -> (i32, i32, i32, i32) {
    %c0_i32 = arith.constant 0 : i32
    %c0_i32_0 = arith.constant 0 : i32
    %c0_i32_1 = arith.constant 0 : i32
    %c0_i32_2 = arith.constant 0 : i32
    return %arg0, %c0_i32, %c0_i32_0, %c0_i32_1 : i32, i32, i32, i32
  }
  func.func @transform_3(%arg0: i32) -> (i32, i32) {
    %c0_i32 = arith.constant 0 : i32
    %c0_i32_0 = arith.constant 0 : i32
    %c0_i32_1 = arith.constant 0 : i32
    return %c0_i32, %c0_i32_0 : i32, i32
  }
  func.func @transform_4(%arg0: i32) -> (i32, i32) {
    %c0_i32 = arith.constant 0 : i32
    %c0_i32_0 = arith.constant 0 : i32
    %c0_i32_1 = arith.constant 0 : i32
    return %c0_i32, %c0_i32_0 : i32, i32
  }
  func.func @transform_5(%arg0: i32) -> (i32, i32) {
    %c0_i32 = arith.constant 0 : i32
    %c0_i32_0 = arith.constant 0 : i32
    %c0_i32_1 = arith.constant 0 : i32
    return %c0_i32, %c0_i32_0 : i32, i32
  }
  func.func @transform_6(%arg0: i32) -> (i32, i32) {
    %c0_i32 = arith.constant 0 : i32
    %c0_i32_0 = arith.constant 0 : i32
    %c0_i32_1 = arith.constant 0 : i32
    return %c0_i32, %c0_i32_0 : i32, i32
  }
  func.func @transform_7(%arg0: i32) -> (i32, i32) {
    %c0_i32 = arith.constant 0 : i32
    %c0_i32_0 = arith.constant 0 : i32
    %c0_i32_1 = arith.constant 0 : i32
    return %c0_i32, %c0_i32_0 : i32, i32
  }
  func.func @transform_8(%arg0: i32) -> (i32, i32, i32) {
    %c0_i32 = arith.constant 0 : i32
    %c0_i32_0 = arith.constant 0 : i32
    %c0_i32_1 = arith.constant 0 : i32
    return %arg0, %c0_i32, %c0_i32_0 : i32, i32, i32
  }
}

</mosaic_0001>

<bundles_post_ra>
// kernel: tpu_custom_call.1
= control target key start
LH: loop header
LB: loop body
LE: loop exit
PB: predicated region body
PF: predicated region fallthrough
CT: control target
= control target key end

     0   :  { %s5578_s0 = inlined_call_operand.hbm [shape: f32[2,32,64], index: 0, kind: input, shape index: {}]   ;;  %s5579_s1 = inlined_call_operand.vmem [shape: bf16[2,1,32], index: 1, kind: input, shape index: {}]   ;;  %s5580_s2 = inlined_call_operand.hbm [shape: bf16[2,4,32,32], index: 2, kind: input, shape index: {}]   ;;  %s5581_s3 = inlined_call_operand.vmem [shape: f32[1,64], index: 3, kind: input, shape index: {}]   ;;  %s5582_s4 = inlined_call_operand.vmem [shape: f32[1,64], index: 4, kind: input, shape index: {}]   ;;  %s5583_s5 = inlined_call_operand.hbm [shape: bf16[64,256], index: 5, kind: input, shape index: {}]   ;;  %s5584_s6 = inlined_call_operand.vmem [shape: f32[1,256], index: 6, kind: input, shape index: {}]   ;;  %s5585_s7 = inlined_call_operand.hbm [shape: bf16[64,64], index: 7, kind: input, shape index: {}]   ;;  %s5586_s8 = inlined_call_operand.hbm [shape: f32[2,32,64], index: 8, kind: output, shape index: {}]  }
   0x1   :  { %5597 = sst [smem:[#allocation19_spill]] %s5578_s0 }
   0x2   :  { %5598 = sst [smem:[#allocation20_spill]] %s5583_s5 }
   0x3   :  { %5599 = sst [smem:[#allocation21_spill]] %s5585_s7 }
   0x4   :  { %13 = vsyncpa [#allocation3], 0 }
   0x5   :  { %15 = vsyncpa [#allocation3 + $0x1], 0 }
   0x6   :  { %16 = vsyncpa [#allocation6], 0 }
   0x7   :  { %18 = vsyncpa [#allocation6 + $0x1], 0 }
   0x8   :  { %19 = vsyncpa [#allocation9], 0 }
   0x9   :  { %20 = vsyncpa [#allocation4], 0 }
   0xa   :  { %22 = vsyncpa [#allocation4 + $0x1], 0  ;;  %s4528_s27 = smov 0   ;;  %s4530_s28 = smov 0  }
   0xb   :  { %s4532_s29 = smov 0   ;;  %s4534_s30 = smov 0  }
   0xc LB: > { %5600 = sst [smem:[#allocation16_spill]] %s4456_s29  ;;  %s4549_s9 = sadd.s32 4294967295, %s4460_s30   ;;  %s4460_s30 = sphi %s4534_s30, %s5626_s30   ;;  %s4456_s29 = sphi %s4532_s29, %s5628_s29   ;;  %s4452_s28 = sphi %s4530_s28, %s5630_s28   ;;  %s4448_s27 = sphi %s4528_s27, %s5629_s27  }
   0xd   : > { %s3817_s10 = sadd.s32 4294967294, %s4460_s30   ;;  %p48_p0 = scmp.ne.s32.totalorder %s4452_s28, %s4448_s27 }
   0xe   : > { %p5587_p1 = scmp.eq.s32.totalorder %s4549_s9, 0  ;;  %p235_p3 = scmp.eq.s32.totalorder %s3817_s10, 1 }
   0xf   : > { %p3818_p5 = scmp.ge.s32.totalorder %s4460_s30, 1  ;;  %p242_p7 = scmp.lt.s32.totalorder %s4460_s30, 3 }
  0x10   : > { %p4558_p4 = por %p5587_p1, %p48_p0  ;;  %p4563_p6 = por %p235_p3, %p48_p0 }
  0x11   : > { %p4568_p8 = pnand %p3818_p5, %p242_p7  ;;  %s4462_s14 = smov [#allocation7]  }
  0x12   : > { %s5601_s11 = scalar_select %p4558_p4, 1, 0 }
  0x13   : > { %s5602_s12 = scalar_select %p4563_p6, 1, 0 }
  0x14   : > { %s260_s15 = sshll.u32 %s4462_s14, 4  ;;  %p4088_p9 = pneg %p4568_p8  ;;  %s4572_s15 = int_to_ptr.vmem [resolvable:$true] %s260_s15 }
  0x15   : > { %s4463_s17 = smov [#allocation8]   ;;  %s5605_s5 = sld [smem:[#allocation20_spill]] }
  0x16   : > { %p4579_p11 = pnand %p4088_p9, %p5587_p1  ;;  %s276_s18 = sshll.u32 %s4463_s17, 4  ;;  %s4583_s18 = int_to_ptr.vmem [resolvable:$true] %s276_s18 }
  0x18   : > { %p4268_p13 = pneg %p4579_p11 }
  0x1b   : > { %s4266_s21 = scalar_lea.hbm %s5605_s5, 1024 }
  0x1c   : > { %p4267_p12 = scmp.ne.s32.totalorder %s5605_s5, %s4266_s21  ;;  %p4273_p5 = scmp.lt.u32.totalorder %s4266_s21, %s5605_s5 }
  0x1e   : > { %p4269_p0 = pnand %p4268_p13, %p4267_p12 }
  0x20   : > { %p4270_p3 = pneg %p4269_p0 }
  0x22   : > { %p4275_p7 = pnand %p4273_p5, %p4270_p3 }
  0x24   : > { %4278 = shalt.err (!%p4275_p7)
}
  0x25   : > { %s4279_s26 = scalar_lea.vmem %s4572_s15, 1024  ;;  %p4287_p2 = scmp.lt.s32.totalorder %s4572_s15, %s4572_s15 }
  0x26   : > { %p4280_p9 = scmp.ne.s32.totalorder %s4572_s15, %s4279_s26  ;;  %p4288_p12 = scmp.lt.s32.totalorder %s4279_s26, %s4279_s26 }
  0x28   : > { %p4282_p10 = pnand %p4280_p9, %p4268_p13  ;;  %p4289_p0 = por %p4288_p12, %p4287_p2 }
  0x2a   : > { %p4283_p1 = pneg %p4282_p10 }
  0x2c   : > { %p4290_p6 = pnand %p4289_p0, %p4283_p1 }
  0x2e   : > { %4293 = shalt.err (!%p4290_p6)
}
  0x2f   : > { %s5590_s10 = smov 128   ;;  %s5591_s14 = smov 8  }
  0x30   : > { %4091 = dma.hbm_to_vmem [thread:$0]  (!%p4579_p11), %s5605_s5, 1024, %s4572_s15, [#allocation6], %s5590_s10, %s5590_s10, %s5591_s14  }
  0x31   : > { %s5606_s7 = sld [smem:[#allocation21_spill]] }
  0x37   : > { %s4294_s22 = scalar_lea.hbm %s5606_s7, 512 }
  0x38   : > { %p4295_p1 = scmp.ne.s32.totalorder %s5606_s7, %s4294_s22  ;;  %p4301_p10 = scmp.lt.u32.totalorder %s4294_s22, %s5606_s7 }
  0x3a   : > { %p4297_p2 = pnand %p4295_p1, %p4268_p13 }
  0x3c   : > { %p4298_p6 = pneg %p4297_p2 }
  0x3e   : > { %p4303_p3 = pnand %p4301_p10, %p4298_p6 }
  0x40   : > { %4306 = shalt.err (!%p4303_p3)
}
  0x41   : > { %s4307_s15 = scalar_lea.vmem %s4583_s18, 512  ;;  %p4315_p12 = scmp.lt.s32.totalorder %s4583_s18, %s4583_s18 }
  0x42   : > { %p4308_p5 = scmp.ne.s32.totalorder %s4583_s18, %s4307_s15  ;;  %p4316_p0 = scmp.lt.s32.totalorder %s4307_s15, %s4307_s15 }
  0x44   : > { %p4310_p7 = pnand %p4308_p5, %p4268_p13  ;;  %p4317_p1 = por %p4316_p0, %p4315_p12 }
  0x46   : > { %p4311_p9 = pneg %p4310_p7 }
  0x48   : > { %p4318_p2 = pnand %p4317_p1, %p4311_p9 }
  0x4a   : > { %4321 = shalt.err (!%p4318_p2)
}
  0x4b   : > { %s5588_s17 = smov 64   ;;  %s5589_s19 = smov 4  }
  0x4c   : > { %4094 = dma.hbm_to_vmem [thread:$0]  (!%p4579_p11), %s5606_s7, 512, %s4583_s18, [#allocation9], %s5588_s17, %s5588_s17, %s5589_s19  }
  0x4d   : > { %s4644_s22 = sadd.s32 1, %s4460_s30   ;;  %s35_s24 = sadd.s32 1, %s4456_s29 }
  0x4e   : > { %5607 = sst [smem:[#allocation17_spill]] %s4644_s22  ;;  %s32_s23 = ssub.s32 %s4460_s30, %s4644_s22 }
  0x4f   : > { %p33_p13 = scmp.eq.s32.totalorder %s32_s23, 0  ;;  %p42_p6 = scmp.ne.s32.totalorder %s4456_s29, %s4452_s28 }
  0x50   : > { %p43_p10 = scmp.eq.s32.totalorder %s4460_s30, 0  ;;  %p5609_p5 = scmp.eq.s32.totalorder %s4549_s9, 1 }
  0x51   : > { %s4653_s25 = scalar_select %p33_p13, %s4456_s29, %s35_s24  }
  0x52   : > { %p44_p3 = por %p43_p10, %p42_p6  ;;  %p4657_p7 = por %p5609_p5, %p42_p6 }
  0x53   : > { %5608 = sst [smem:[#allocation18_spill]] %s4653_s25  ;;  %p4108_p9 = scmp.lt.s32.totalorder %s4460_s30, 2 }
  0x54   : > { %s5610_s16 = scalar_select %p4657_p7, 1, 0 }
  0x55   : > { %s4663_s26 = sand.u32 1, %s4456_s29   ;;  %s3910_s15 = sshll.u32 %s4460_s30, 9 }
  0x56   : > { %s3822_s18 = sshll.u32 %s4663_s26, 5  ;;  %s5611_s0 = sld [smem:[#allocation19_spill]] }
  0x57   : > { %s294_s24 = scalar_lea.vmem [#allocation2], %s3822_s18  ;;  %p4674_p11 = pnand %p4108_p9, %p44_p3 }
  0x58   : > { %s301_s17 = sshll.u32 %s294_s24, 4  ;;  %s3825_s14 = sshll.u32 %s4663_s26, 6  ;;  %s4672_s17 = int_to_ptr.vmem [resolvable:$true] %s301_s17 }
  0x59   : > { %s291_s5 = scalar_lea.sflag [#allocation3], %s4663_s26  ;;  %p4324_p0 = pneg %p4674_p11 }
  0x5c   : > { %s4670_s23 = scalar_lea.hbm %s5611_s0, %s3910_s15  ;;  %s4327_s21 = scalar_lea.hbm %s5611_s0, 1024 }
  0x5d   : > { %s4322_s20 = scalar_lea.hbm %s4670_s23, 512  ;;  %p4328_p13 = scmp.lt.u32.totalorder %s4670_s23, %s5611_s0 }
  0x5e   : > { %p4323_p12 = scmp.ne.s32.totalorder %s4670_s23, %s4322_s20  ;;  %p4329_p6 = scmp.lt.u32.totalorder %s4327_s21, %s4322_s20 }
  0x5f   : > { %p4331_p3 = scmp.lt.u32.totalorder %s4322_s20, %s4670_s23 }
  0x60   : > { %p4325_p1 = pnand %p4324_p0, %p4323_p12  ;;  %p4330_p10 = por %p4329_p6, %p4328_p13 }
  0x62   : > { %p4326_p2 = pneg %p4325_p1  ;;  %p4332_p5 = por %p4331_p3, %p4330_p10 }
  0x64   : > { %p4333_p9 = pnand %p4332_p5, %p4326_p2 }
  0x66   : > { %4336 = shalt.err (!%p4333_p9)
}
  0x67   : > { %s4337_s10 = scalar_lea.vmem %s4672_s17, 512  ;;  %s4468_s18 = smov [#allocation2]  }
  0x68   : > { %p4338_p12 = scmp.ne.s32.totalorder %s4672_s17, %s4337_s10  ;;  %s4342_s15 = sshll.u32 %s4468_s18, 4  ;;  %s4343_s15 = int_to_ptr.vmem [resolvable:$false] %s4342_s15 }
  0x69   : > { %s4344_s7 = scalar_lea.vmem %s4343_s15, 1024  ;;  %p4345_p4 = scmp.lt.s32.totalorder %s4672_s17, %s4343_s15 }
  0x6a   : > { %p4340_p1 = pnand %p4338_p12, %p4324_p0  ;;  %p4346_p13 = scmp.lt.s32.totalorder %s4344_s7, %s4337_s10 }
  0x6c   : > { %p4341_p7 = pneg %p4340_p1  ;;  %p4347_p6 = por %p4346_p13, %p4345_p4 }
  0x6e   : > { %p4348_p10 = pnand %p4347_p6, %p4341_p7 }
  0x70   : > { %4351 = shalt.err (!%p4348_p10)
}
  0x71   : > { %s5613_s20 = smov 8   ;;  %s5614_s21 = smov 128  }
  0x72   : > { %4098 = dma.hbm_to_vmem [thread:$0]  (!%p4674_p11), %s4670_s23, 512, %s4672_s17, %s291_s5, %s5614_s21, %s5614_s21, %s5613_s20  }
  0x73   : > { %s3911_s24 = sshll.u32 %s4460_s30, 10  ;;  %s321_s7 = scalar_lea.vmem [#allocation5], %s3825_s14 }
  0x74   : > { %s4715_s15 = scalar_lea.hbm %s5580_s2, %s3911_s24  ;;  %s328_s0 = sshll.u32 %s321_s7, 4  ;;  %s4719_s0 = int_to_ptr.vmem [resolvable:$true] %s328_s0 }
  0x75   : > { %s5615_s25 = sand.u32 1, %s4460_s30   ;;  %s4352_s22 = scalar_lea.hbm %s4715_s15, 1024 }
  0x76   : > { %s4723_s29 = scalar_lea.sflag [#allocation6], %s5615_s25  ;;  %p4353_p4 = scmp.ne.s32.totalorder %s4715_s15, %s4352_s22 }
  0x77   : > { %s4357_s26 = scalar_lea.hbm %s5580_s2, 2048  ;;  %p4358_p3 = scmp.lt.u32.totalorder %s4715_s15, %s5580_s2 }
  0x78   : > { %p4355_p7 = pnand %p4353_p4, %p4324_p0  ;;  %p4359_p5 = scmp.lt.u32.totalorder %s4357_s26, %s4352_s22 }
  0x79   : > { %p4361_p12 = scmp.lt.u32.totalorder %s4352_s22, %s4715_s15 }
  0x7a   : > { %p4356_p2 = pneg %p4355_p7  ;;  %p4360_p9 = por %p4359_p5, %p4358_p3 }
  0x7c   : > { %p4362_p1 = por %p4361_p12, %p4360_p9 }
  0x7e   : > { %p4363_p13 = pnand %p4362_p1, %p4356_p2 }
  0x80   : > { %4366 = shalt.err (!%p4363_p13)
}
  0x81   : > { %s4367_s14 = scalar_lea.vmem %s4719_s0, 1024  ;;  %s4469_s25 = smov [#allocation5]  }
  0x82   : > { %p4368_p6 = scmp.ne.s32.totalorder %s4719_s0, %s4367_s14  ;;  %s4372_s21 = sshll.u32 %s4469_s25, 4  ;;  %s4373_s21 = int_to_ptr.vmem [resolvable:$false] %s4372_s21 }
  0x83   : > { %s4374_s24 = scalar_lea.vmem %s4373_s21, 2048  ;;  %p4375_p7 = scmp.lt.s32.totalorder %s4719_s0, %s4373_s21 }
  0x84   : > { %p4370_p10 = pnand %p4368_p6, %p4324_p0  ;;  %p4376_p3 = scmp.lt.s32.totalorder %s4374_s24, %s4367_s14 }
  0x86   : > { %p4371_p4 = pneg %p4370_p10  ;;  %p4377_p5 = por %p4376_p3, %p4375_p7 }
  0x88   : > { %p4378_p9 = pnand %p4377_p5, %p4371_p4 }
  0x8a   : > { %4381 = shalt.err (!%p4378_p9)
}
  0x8b   : > { %s5616_s22 = smov 4   ;;  %s5617_s18 = smov 64  }
  0x8c   : > { %4101 = dma.hbm_to_vmem [thread:$0]  (!%p4674_p11), %s4715_s15, 1024, %s4719_s0, %s4723_s29, %s5617_s18, %s5617_s18, %s5616_s22  }
  0x8d   : > { %340 = sbr.rel (%p4568_p8) target bundleno = 2215 (0x8a7), region = 52  ;;  %s4755_s10 = sand.u32 (!%p4568_p8), 1, %s4452_s28  }
  0x8e   : > { %s3829_s7 = sshll.u32 (!%p4568_p8), %s4755_s10, 5  ;;  %s343_s5 = scalar_lea.sflag (!%p4568_p8), [#allocation3], %s4755_s10 }
  0x8f   : > { %s346_s19 = scalar_lea.vmem (!%p4568_p8), [#allocation2], %s3829_s7  ;;  %p5618_p0 = scmp.ne.s32.totalorder (!%p4568_p8), %s5601_s11, 0 }
  0x94   : > { %4427 = dma.done.wait (%p5618_p0), %s343_s5, 512  }
  0x95   : > { %4429 = vsyncadd (%p5618_p0), %s343_s5, 4294966784  ;;  %s351_s0 = sand.u32 1, %s4549_s9   ;;  %s3830_s29 = sshll.u32 %s4755_s10, 6 }
  0x96   : > { %s352_s13 = scalar_lea.sflag [#allocation6], %s351_s0  ;;  %s4767_s15 = scalar_lea.vmem [#allocation5], %s3830_s29 }
  0x97   : > { %4431 = dma.done.wait (%p5618_p0), %s352_s13, 1024  }
  0x98   : > { %4433 = vsyncadd (%p5618_p0), %s352_s13, 4294966272  ;;  %p5619_p8 = scmp.eq.s32.totalorder %s4549_s9, 0 }
  0x9a   : > { %4435 = dma.done.wait (%p5619_p8), [#allocation6], 1024   ;;  %p5620_p11 = pmov %p5619_p8 }
  0x9b   : > { %p5621_p2 = pmov %p5619_p8 }
  0x9c   : > { %4437 = vsyncadd (%p5620_p11), [#allocation6], 4294966272 }
  0x9d   : > { %4439 = dma.done.wait (%p5621_p2), [#allocation9], 512   ;;  %p5622_p12 = pmov %p5621_p2 }
  0x9e   : > { %vm412_vm0 = vcmask 523264   ;;  %v408_v0 = vld [vmem:[%s346_s19] sm:$0xff]  ;;  %v410_v1 = vld [vmem:[%s346_s19 + $0x10] sm:$0xff]  ;;  %v409_v2 = vld [vmem:[%s346_s19 + $0x8] sm:$0xff]  ;;  %v4470_v36 = vmov 0   ;;  %s4471_s25 = smov 96  }
  0x9f   : > { %4441 = vsyncadd (%p5622_p12), [#allocation9], 4294966784  ;;  %v413_v3 = vsel %vm412_vm0, %v408_v0, 0.0  ;;  %v419_v4 = vsel %vm412_vm0, %v410_v1, 0.0  ;;  %v411_v5 = vld [vmem:[%s346_s19 + $0x18] sm:$0xff]  ;;  %v416_v6 = vsel %vm412_vm0, %v409_v2, 0.0  ;;  %588 = vmatprep.mubr.bf16.mxu0 %v4470_v36 }
  0xa0   : > { %414 = vadd.xlane.f32.xlu0 %v413_v3  ;;  %420 = vadd.xlane.f32.xlu1 %v419_v4  ;;  %v422_v7 = vsel %vm412_vm0, %v411_v5, 0.0  ;;  %v4162_v28 = vld [vmem:[#allocation7 + $0x4] ss:$8 sps:$4 sm:$0xff]   ;;  %v4164_v29 = vld [vmem:[#allocation7] ss:$8 sps:$4 sm:$0xff]   ;;  %s4472_s21 = smov 112  }
  0xa1   : > { %556 = vmatprep.subr.bf16.mxu0 %v4162_v28  ;;  %v4165_v30 = vld [vmem:[#allocation7 + $0x14] ss:$8 sps:$4 sm:$0xff]   ;;  %v4167_v31 = vld [vmem:[#allocation7 + $0x10] ss:$8 sps:$4 sm:$0xff]   ;;  %v4168_v32 = vld [vmem:[#allocation7 + $0x24] ss:$8 sps:$4 sm:$0xff]  }
  0xa2   : > { %557 = vmatpush1.bf16.msra.mxu0 %v4164_v29  ;;  %v4170_v33 = vld [vmem:[#allocation7 + $0x20] ss:$8 sps:$4 sm:$0xff]   ;;  %v4171_v34 = vld [vmem:[#allocation7 + $0x34] ss:$8 sps:$4 sm:$0xff]   ;;  %v4173_v35 = vld [vmem:[#allocation7 + $0x30] ss:$8 sps:$4 sm:$0xff]  }
  0xa3   : > { %558 = vmatprep.subr.bf16.mxu0 %v4165_v30  ;;  %v3834_v51 = vld [vmem:[%s5581_s3] ss:$0 sm:$0xff]  ;;  %s4473_s24 = smov 80   ;;  %s4474_s22 = smov 64   ;;  %vm2267_vm1 = vcmask 130048   ;;  %vm2532_vm2 = vcmask 261120  }
  0xa4   : > { %417 = vadd.xlane.f32.xlu0 %v416_v6  ;;  %423 = vadd.xlane.f32.xlu1 %v422_v7  ;;  %v3835_v56 = vld [vmem:[%s5582_s4] ss:$0 sm:$0xff]  ;;  %p404_p1 = scmp.lt.s32.totalorder %s4549_s9, 1  ;;  %s4477_s29 = smov 32   ;;  %vm3537_vm3 = vcmask 392192  }
  0xa5   : > { %s4478_s13 = smov 16   ;;  %s403_s11 = scalar_lea.vmem [#allocation10], %s3829_s7 }
  0xa6   : > { %559 = vmatpush1.bf16.msra.mxu0 %v4167_v31  ;;  %s405_s18 = scalar_select %p404_p1, %s4549_s9, 1 }
  0xa7   : > { %560 = vmatprep.subr.bf16.mxu0 %v4168_v32  ;;  %v4475_v32 = vmov 1983009808   ;;  %s3693_s17 = sshll.u32 %s403_s11, 4  ;;  %s3912_s26 = sshll.u32 %s4549_s9, 9  ;;  %s5525_s17 = int_to_ptr.vmem [resolvable:$true] %s3693_s17 }
  0xa8   : > { %s406_s0 = scalar_lea.vmem %s5579_s1, %s405_s18  ;;  %s5531_s14 = scalar_lea.hbm %s5586_s8, %s3912_s26 }
  0xa9   : > { %s3680_s9 = scalar_lea.sflag [#allocation4], %s4755_s10  ;;  %s4382_s7 = scalar_lea.vmem %s5525_s17, 512 }
  0xaa   : > { %561 = vmatpush1.bf16.msra.mxu0 %v4170_v33  ;;  %v665_v33 = vunpack.c.l.s4 %v4475_v32  ;;  %p4383_p13 = scmp.ne.s32.totalorder %s5525_s17, %s4382_s7  ;;  %p5623_p6 = scmp.ne.s32.totalorder %s5610_s16, 0 }
  0xab   : > { %562 = vmatprep.subr.bf16.mxu0 %v4171_v34 }
  0xac   : > { %v666_v34 = vunpack.c.0.s8 %v665_v33  ;;  %p4384_p10 = pnand %p4383_p13, %p5623_p6 }
  0xae   : > { %563 = vmatpush1.bf16.msra.mxu0 %v4173_v35  ;;  %v4476_v35 = vmov 1934713408   ;;  %p4385_p4 = pneg %p4384_p10 }
 0x12d   : > { %v415_v8 = vpop.xlane.xlu0 %414  ;;  %v421_v9 = vpop.xlane.xlu1 %420 }
 0x12e   : > { %v426_v10 = vmul.f32 0.015625, %v415_v8  ;;  %v428_v11 = vmul.f32 0.015625, %v421_v9  ;;  %v498_v8 = vld [vmem:[%s5584_s6] sm:$0x3] }
 0x130   : > { %v430_v12 = vsub.f32 %v408_v0, %v426_v10  ;;  %v4785_v13 = vsub.f32 %v410_v1, %v428_v11 }
 0x131   : > { %v418_v14 = vpop.xlane.xlu0 %417  ;;  %v424_v15 = vpop.xlane.xlu1 %423 }
 0x132   : > { %v427_v16 = vmul.f32 0.015625, %v418_v14  ;;  %v429_v17 = vmul.f32 0.015625, %v424_v15  ;;  %v434_v18 = vmul.f32 %v430_v12, %v430_v12  ;;  %v436_v19 = vmul.f32 %v4785_v13, %v4785_v13 }
 0x134   : > { %v431_v20 = vsub.f32 %v409_v2, %v427_v16  ;;  %v433_v21 = vsub.f32 %v411_v5, %v429_v17  ;;  %v438_v22 = vsel %vm412_vm0, %v434_v18, 0.0  ;;  %v444_v23 = vsel %vm412_vm0, %v436_v19, 0.0 }
 0x135   : > { %439 = vadd.xlane.f32.xlu0 %v438_v22  ;;  %v500_v5 = vlaneseq }
 0x136   : > { %v435_v24 = vmul.f32 %v431_v20, %v431_v20  ;;  %v437_v25 = vmul.f32 %v433_v21, %v433_v21 }
 0x137   : > { %v4804_v6 = vshrl.u32 %v500_v5, 7 }
 0x138   : > { %v441_v26 = vsel %vm412_vm0, %v435_v24, 0.0  ;;  %v447_v27 = vsel %vm412_vm0, %v437_v25, 0.0 }
 0x139   : > { %445 = vadd.xlane.f32.xlu0 %v444_v23  ;;  %442 = vadd.xlane.f32.xlu1 %v441_v26  ;;  %v502_v7 = vsub.s32 0, %v4804_v6  ;;  %v506_v9 = vsub.s32 1, %v4804_v6 }
 0x13b   : > { %v503_v10 = vrot.slane %v498_v8, %v502_v7 }
 0x13d   : > { %448 = vadd.xlane.f32.xlu1 %v447_v27 }
 0x1c2   : > { %v440_v37 = vpop.xlane.xlu0 %439 }
 0x1c3   : > { %v450_v38 = vmul.f32 0.015625, %v440_v37  ;;  %v696_v37 = vunpack.c.l.s4 %v4476_v35 }
 0x1c5   : > { %v454_v39 = vadd.f32 1e-05, %v450_v38  ;;  %v4838_v38 = vpack.i.b16 %v4470_v36, %v4470_v36 }
 0x1c6   : > { %v443_v40 = vpop.xlane.xlu1 %442  ;;  %v446_v41 = vpop.xlane.xlu0 %445 }
 0x1c7   : > { %4178 = vrsqrt.f32 %v454_v39  ;;  %v451_v42 = vmul.f32 0.015625, %v443_v40  ;;  %v452_v43 = vmul.f32 0.015625, %v446_v41 }
 0x1c9   : > { %v455_v44 = vadd.f32 1e-05, %v451_v42  ;;  %v456_v45 = vadd.f32 1e-05, %v452_v43 }
 0x1ca   : > { %v449_v46 = vpop.xlane.xlu1 %448 }
 0x1cb   : > { %4180 = vrsqrt.f32 %v455_v44  ;;  %v453_v47 = vmul.f32 0.015625, %v449_v46  ;;  %v4843_v44 = vsub.s32 %v666_v34, %v4804_v6 }
 0x1cc   : > { %4182 = vrsqrt.f32 %v456_v45  ;;  %v697_v45 = vunpack.c.0.s8 %v696_v37 }
 0x1cd   : > { %v457_v48 = vadd.f32 1e-05, %v453_v47 }
 0x1cf   : > { %4184 = vrsqrt.f32 %v457_v48 }
 0x1d1   : > { %v4179_v49 = vpop.eup %4178 }
 0x1d2   : > { %v462_v50 = vmul.f32 %v4179_v49, %v430_v12  ;;  %v507_v12 = vrot.slane %v498_v8, %v506_v9 }
 0x1d4   : > { %v473_v54 = vmul.f32 %v3834_v51, %v462_v50 }
 0x1d5   : > { %v4181_v52 = vpop.eup %4180 }
 0x1d6   : > { %v463_v53 = vmul.f32 %v4181_v52, %v431_v20  ;;  %v4183_v55 = vpop.eup %4182  ;;  %v484_v61 = vadd.f32 %v3835_v56, %v473_v54  ;;  %v4850_v52 = vsub.s32 %v697_v45, %v4804_v6 }
 0x1d7   : > { %v464_v59 = vmul.f32 %v4183_v55, %v4785_v13 }
 0x1d8   : > { %v474_v57 = vmul.f32 %v3834_v51, %v463_v53 }
 0x1d9   : > { %v4185_v58 = vpop.eup %4184  ;;  %v475_v1 = vmul.f32 %v3834_v51, %v464_v59 }
 0x1da   : > { %v465_v60 = vmul.f32 %v4185_v58, %v433_v21  ;;  %v485_v62 = vadd.f32 %v3835_v56, %v474_v57 }
 0x1db   : > { %v486_v3 = vadd.f32 %v3835_v56, %v475_v1 }
 0x1dc   : > { %v488_v63 = vpack.c.bf16 %v485_v62, %v484_v61  ;;  %v476_v0 = vmul.f32 %v3834_v51, %v465_v60 }
 0x1de   : > { %3844 = vmatmul.mubr.msk.bf16.vlgmr.msra.gmra.mrb[0].mxu0 %vm412_vm0, %v488_v63  ;;  %v487_v2 = vadd.f32 %v3835_v56, %v476_v0 }
 0x1df   : > { %598 = vmatprep.mubr.bf16.mxu0 %v4470_v36 }
 0x1e0   : > { %v489_v4 = vpack.c.bf16 %v487_v2, %v486_v3 }
 0x1e6   : > { %3845 = vmatmul.mubr.msk.bf16.gmra.mrb[4].mxu0 %vm412_vm0, %v489_v4 }
 0x2b1   : > { %v590_v11 = vpop.f32.mrb[0].mxu0 }
 0x2b2   : > { %v592_v13 = vpop.f32.mrb[1].mxu0  ;;  %v591_v15 = vadd.f32 %v590_v11, %v503_v10 }
 0x2b3   : > { %v594_v14 = vpop.f32.mrb[2].mxu0  ;;  %v4813_v18 = vadd.f32 %v592_v13, %v507_v12 }
 0x2b4   : > { %v595_v16 = vadd.f32 %v594_v14, %v503_v10  ;;  %v596_v17 = vpop.f32.mrb[3].mxu0 }
 0x2b5   : > { %v4815_v19 = vadd.f32 %v596_v17, %v507_v12 }
 0x2b6   : > { %v609_v20 = vpack.c.bf16 %v595_v16, %v591_v15 }
 0x2b7   : > { %v4819_v21 = vpack.c.bf16 %v4815_v19, %v4813_v18 }
 0x2b8   : > { %617 = vrot.lane.b32.xlu1 %v609_v20, %s4471_s25  ;;  %613 = vrot.lane.b32.xlu0 %v609_v20, %s4472_s21  ;;  %v629_v41 = vshrl.u32 %v609_v20, 16 }
 0x2b9   : > { %v600_v22 = vpop.f32.mrb[4].mxu0 }
 0x2ba   : > { %v602_v23 = vpop.f32.mrb[5].mxu0  ;;  %v601_v25 = vadd.f32 %v600_v22, %v503_v10 }
 0x2bb   : > { %v604_v24 = vpop.f32.mrb[6].mxu0  ;;  %v4824_v28 = vadd.f32 %v602_v23, %v507_v12 }
 0x2bc   : > { %v605_v26 = vadd.f32 %v604_v24, %v503_v10  ;;  %621 = vrot.lane.b32.xlu1 %v609_v20, %s4473_s24  ;;  %v606_v27 = vpop.f32.mrb[7].mxu0 }
 0x2bd   : > { %v4826_v29 = vadd.f32 %v606_v27, %v507_v12 }
 0x2be   : > { %v610_v30 = vpack.c.bf16 %v605_v26, %v601_v25 }
 0x2bf   : > { %v4830_v31 = vpack.c.bf16 %v4826_v29, %v4824_v28 }
 0x2c0   : > { %619 = vrot.lane.b32.xlu0 %v610_v30, %s4471_s25  ;;  %615 = vrot.lane.b32.xlu1 %v610_v30, %s4472_s21  ;;  %v651_v60 = vshrl.u32 %v610_v30, 16 }
 0x2c4   : > { %1151 = vrot.lane.b32.xlu0 %v609_v20, %s4474_s22  ;;  %623 = vrot.lane.b32.xlu1 %v610_v30, %s4473_s24 }
 0x32a   : > { %v618_v39 = vpop.permute.xlu1 %617  ;;  %v614_v40 = vpop.permute.xlu0 %613 }
 0x32b   : > { %v627_v42 = vpack.i.b16 %v614_v40, %v609_v20  ;;  %v630_v43 = vshrl.u32 %v614_v40, 16  ;;  %1159 = vrot.lane.b32.xlu0 %v618_v39, %s4474_s22  ;;  %1155 = vrot.lane.b32.xlu1 %v614_v40, %s4474_s22  ;;  %v637_v36 = vshrl.u32 %v618_v39, 16 }
 0x32d   : > { %v631_v46 = vpack.i.b16 %v630_v43, %v629_v41  ;;  %v663_v47 = vcombine.high %v627_v42, %v4838_v38  ;;  %v670_v53 = vrot.slane %v627_v42, %v4843_v44 }
 0x32e   : > { %v622_v48 = vpop.permute.xlu1 %621 }
 0x32f   : > { %v635_v49 = vpack.i.b16 %v622_v48, %v618_v39  ;;  %1153 = vrot.lane.b32.xlu0 %v610_v30, %s4474_s22  ;;  %v729_v50 = vcombine.high %v631_v46, %v4838_v38  ;;  %v638_v51 = vshrl.u32 %v622_v48, 16  ;;  %1163 = vrot.lane.b32.xlu1 %v622_v48, %s4474_s22  ;;  %v677_v56 = vrot.slane %v663_v47, %v4843_v44 }
 0x330   : > { %v736_v57 = vrot.slane %v631_v46, %v4843_v44 }
 0x331   : > { %v678_v54 = vcombine.high %v635_v49, %v4838_v38  ;;  %v685_v55 = vrot.slane %v635_v49, %v4843_v44  ;;  %v639_v58 = vpack.i.b16 %v638_v51, %v637_v36  ;;  %v743_v2 = vrot.slane %v729_v50, %v4843_v44 }
 0x332   : > { %v616_v59 = vpop.permute.xlu1 %615  ;;  %v620_v61 = vpop.permute.xlu0 %619 }
 0x333   : > { %v692_v62 = vrot.slane %v678_v54, %v4843_v44  ;;  %v693_v63 = vcombine.low %v670_v53, %v685_v55  ;;  %v694_v0 = vcombine.high %v670_v53, %v685_v55  ;;  %v649_v1 = vpack.i.b16 %v616_v59, %v610_v30  ;;  %1161 = vrot.lane.b32.xlu0 %v620_v61, %s4474_s22 }
 0x334   : > { %v744_v3 = vcombine.high %v639_v58, %v4838_v38  ;;  %v751_v4 = vrot.slane %v639_v58, %v4843_v44  ;;  %v652_v5 = vshrl.u32 %v616_v59, 16  ;;  %1157 = vrot.lane.b32.xlu1 %v616_v59, %s4474_s22  ;;  %v659_v11 = vshrl.u32 %v620_v61, 16 }
 0x335   : > { %v701_v8 = vrot.slane %v693_v63, %v4850_v52  ;;  %v709_v9 = vcombine.low %v677_v56, %v692_v62  ;;  %v710_v10 = vcombine.high %v677_v56, %v692_v62  ;;  %v708_v17 = vrot.slane %v694_v0, %v4850_v52 }
 0x336   : > { %v758_v12 = vrot.slane %v744_v3, %v4843_v44  ;;  %v759_v13 = vcombine.low %v736_v57, %v751_v4  ;;  %v760_v14 = vcombine.high %v736_v57, %v751_v4  ;;  %v653_v15 = vpack.i.b16 %v652_v5, %v651_v60  ;;  %v624_v16 = vpop.permute.xlu1 %623 }
 0x337   : > { %v717_v20 = vrot.slane %v709_v9, %v4850_v52  ;;  %v724_v22 = vrot.slane %v710_v10, %v4850_v52  ;;  %v795_v23 = vcombine.high %v649_v1, %v4838_v38  ;;  %v802_v27 = vrot.slane %v649_v1, %v4843_v44 }
 0x338   : > { %v4870_v24 = vrot.slane %v759_v13, %v4850_v52  ;;  %v775_v25 = vcombine.low %v743_v2, %v758_v12  ;;  %v776_v26 = vcombine.high %v743_v2, %v758_v12  ;;  %1165 = vrot.lane.b32.xlu1 %v624_v16, %s4474_s22  ;;  %v774_v30 = vrot.slane %v760_v14, %v4850_v52 }
 0x339   : > { %v809_v32 = vrot.slane %v795_v23, %v4843_v44  ;;  %v861_v33 = vcombine.high %v653_v15, %v4838_v38  ;;  %v657_v34 = vpack.i.b16 %v624_v16, %v620_v61  ;;  %v868_v35 = vrot.slane %v653_v15, %v4843_v44 }
 0x33a   : > { %v660_v37 = vshrl.u32 %v624_v16, 16  ;;  %v783_v39 = vrot.slane %v775_v25, %v4850_v52  ;;  %v790_v40 = vrot.slane %v776_v26, %v4850_v52  ;;  %v927_v45 = vcombine.low %v701_v8, %v708_v17 }
 0x33b   : > { %v875_v41 = vrot.slane %v861_v33, %v4843_v44  ;;  %v810_v42 = vcombine.high %v657_v34, %v4838_v38  ;;  %v817_v43 = vrot.slane %v657_v34, %v4843_v44  ;;  %v3846_v47 = vcombine.high %v701_v8, %v708_v17 }
 0x33c   : > { %v661_v46 = vpack.i.b16 %v660_v37, %v659_v11  ;;  %v943_v48 = vcombine.low %v717_v20, %v724_v22  ;;  %v3847_v49 = vcombine.high %v717_v20, %v724_v22  ;;  %v934_v53 = vrot.slane %v927_v45, %v4843_v44 }
 0x33d   : > { %v824_v36 = vrot.slane %v810_v42, %v4843_v44  ;;  %v825_v50 = vcombine.low %v802_v27, %v817_v43  ;;  %v826_v51 = vcombine.high %v802_v27, %v817_v43  ;;  %v942_v56 = vrot.slane %v3846_v47, %v4843_v44 }
 0x33e   : > { %v876_v54 = vcombine.high %v661_v46, %v4838_v38  ;;  %v883_v55 = vrot.slane %v661_v46, %v4843_v44  ;;  %v950_v57 = vrot.slane %v943_v48, %v4843_v44  ;;  %v958_v1 = vrot.slane %v3847_v49, %v4843_v44 }
 0x33f   : > { %v833_v58 = vrot.slane %v825_v50, %v4850_v52  ;;  %v840_v59 = vrot.slane %v826_v51, %v4850_v52  ;;  %v841_v60 = vcombine.low %v809_v32, %v824_v36  ;;  %v842_v61 = vcombine.high %v809_v32, %v824_v36 }
 0x340   : > { %v890_v62 = vrot.slane %v876_v54, %v4843_v44  ;;  %v891_v63 = vcombine.low %v868_v35, %v883_v55  ;;  %v892_v0 = vcombine.high %v868_v35, %v883_v55  ;;  %v959_v23 = vcombine.low %v934_v53, %v942_v56 }
 0x341   : > { %v849_v2 = vrot.slane %v841_v60, %v4850_v52  ;;  %v856_v3 = vrot.slane %v842_v61, %v4850_v52  ;;  %v1027_v4 = vcombine.low %v833_v58, %v840_v59  ;;  %v3850_v5 = vcombine.high %v833_v58, %v840_v59 }
 0x342   : > { %v899_v8 = vrot.slane %v891_v63, %v4850_v52  ;;  %v906_v9 = vrot.slane %v892_v0, %v4850_v52  ;;  %v907_v10 = vcombine.low %v875_v41, %v890_v62  ;;  %v908_v11 = vcombine.high %v875_v41, %v890_v62 }
 0x343   : > { %v1034_v12 = vrot.slane %v1027_v4, %v4843_v44  ;;  %v1042_v13 = vrot.slane %v3850_v5, %v4843_v44  ;;  %v1043_v14 = vcombine.low %v849_v2, %v856_v3  ;;  %v3851_v15 = vcombine.high %v849_v2, %v856_v3 }
 0x344   : > { %v915_v16 = vrot.slane %v907_v10, %v4850_v52  ;;  %v922_v17 = vrot.slane %v908_v11, %v4850_v52  ;;  %v1077_v20 = vcombine.low %v899_v8, %v906_v9  ;;  %v3852_v22 = vcombine.high %v899_v8, %v906_v9 }
 0x345   : > { %v967_v25 = vcombine.low %v950_v57, %v958_v1  ;;  %v977_v26 = vcombine.low %v4870_v24, %v774_v30  ;;  %v3848_v27 = vcombine.high %v4870_v24, %v774_v30  ;;  %v993_v34 = vcombine.low %v783_v39, %v790_v40 }
 0x346   : > { %v1093_v32 = vcombine.low %v915_v16, %v922_v17  ;;  %v3853_v33 = vcombine.high %v915_v16, %v922_v17  ;;  %v3849_v35 = vcombine.high %v783_v39, %v790_v40  ;;  %v966_v37 = vrot.slane %v959_v23, %v4850_v52 }
 0x347   : > { %v974_v41 = vrot.slane %v967_v25, %v4850_v52  ;;  %v984_v42 = vrot.slane %v977_v26, %v4843_v44  ;;  %v992_v43 = vrot.slane %v3848_v27, %v4843_v44  ;;  %v1000_v45 = vrot.slane %v993_v34, %v4843_v44  ;;  %v1152_v27 = vpop.permute.xlu0 %1151 }
 0x348   : > { %v1008_v46 = vrot.slane %v3849_v35, %v4843_v44  ;;  %v1050_v47 = vrot.slane %v1043_v14, %v4843_v44  ;;  %v1058_v24 = vrot.slane %v3851_v15, %v4843_v44  ;;  %v1059_v39 = vcombine.low %v1034_v12, %v1042_v13 }
 0x349   : > { %v4911_v30 = vcombine.high %v966_v37, %v974_v41  ;;  %v1009_v48 = vcombine.low %v984_v42, %v992_v43  ;;  %v1084_v36 = vrot.slane %v1077_v20, %v4843_v44  ;;  %v1092_v50 = vrot.slane %v3852_v22, %v4843_v44 }
 0x34a   : > { %v1017_v40 = vcombine.low %v1000_v45, %v1008_v46  ;;  %v1067_v49 = vcombine.low %v1050_v47, %v1058_v24  ;;  %v975_v51 = vcombine.low %v966_v37, %v974_v41  ;;  %v1066_v54 = vrot.slane %v1059_v39, %v4850_v52 }
 0x34b   : > { %v1016_v53 = vrot.slane %v1009_v48, %v4850_v52  ;;  %v1100_v55 = vrot.slane %v1093_v32, %v4843_v44  ;;  %v1108_v58 = vrot.slane %v3853_v33, %v4843_v44  ;;  %v1109_v59 = vcombine.low %v1084_v36, %v1092_v50 }
 0x34c   : > { %v1024_v56 = vrot.slane %v1017_v40, %v4850_v52  ;;  %v1074_v57 = vrot.slane %v1067_v49, %v4850_v52  ;;  %v1130_v2 = vshrl.u32 %v975_v51, 16  ;;  %v1136_v9 = vshrl.u32 %v4911_v30, 16 }
 0x34d   : > { %v1117_v0 = vcombine.low %v1100_v55, %v1108_v58  ;;  %v1116_v5 = vrot.slane %v1109_v59, %v4850_v52  ;;  %v1171_v34 = vshrl.u32 %v1152_v27, 16 }
 0x34e   : > { %v1025_v60 = vcombine.low %v1016_v53, %v1024_v56  ;;  %v4921_v61 = vcombine.high %v1016_v53, %v1024_v56  ;;  %v4923_v62 = vcombine.low %v1066_v54, %v1074_v57  ;;  %v4925_v63 = vcombine.high %v1066_v54, %v1074_v57 }
 0x34f   : > { %v1124_v8 = vrot.slane %v1117_v0, %v4850_v52 }
 0x350   : > { %v1129_v1 = vpack.i.b16 %v1025_v60, %v975_v51  ;;  %v1131_v3 = vshrl.u32 %v1025_v60, 16  ;;  %v1135_v4 = vpack.i.b16 %v4921_v61, %v4911_v30  ;;  %v1137_v10 = vshrl.u32 %v4921_v61, 16 }
 0x351   : > { %v4934_v12 = vcombine.low %v1116_v5, %v1124_v8  ;;  %v4936_v13 = vcombine.high %v1116_v5, %v1124_v8  ;;  %v1142_v15 = vshrl.u32 %v4923_v62, 16  ;;  %v1148_v16 = vshrl.u32 %v4925_v63, 16 }
 0x352   : > { %3994 = vmatprep.mubr.msk.bf16.mxu1 %vm2267_vm1, %v1129_v1  ;;  %v1132_v11 = vpack.i.b16 %v1131_v3, %v1130_v2  ;;  %v4938_v14 = vpack.i.b16 %v1137_v10, %v1136_v9 }
 0x353   : > { %v1141_v17 = vpack.i.b16 %v4934_v12, %v4923_v62  ;;  %v1143_v20 = vshrl.u32 %v4934_v12, 16  ;;  %v1147_v22 = vpack.i.b16 %v4936_v13, %v4925_v63  ;;  %v1149_v23 = vshrl.u32 %v4936_v13, 16 }
 0x354   : > { %4002 = vmatprep.mubr.msk.bf16.mxu0 %vm2267_vm1, %v1132_v11 }
 0x355   : > { %v4949_v25 = vpack.i.b16 %v1143_v20, %v1142_v15  ;;  %v4951_v26 = vpack.i.b16 %v1149_v23, %v1148_v16 }
 0x39d   : > { %v1156_v32 = vpop.permute.xlu1 %1155  ;;  %v1160_v33 = vpop.permute.xlu0 %1159 }
 0x39e   : > { %v1169_v35 = vpack.i.b16 %v1156_v32, %v1152_v27  ;;  %v1172_v37 = vshrl.u32 %v1156_v32, 16  ;;  %v1179_v46 = vshrl.u32 %v1160_v33, 16 }
 0x3a0   : > { %v1173_v41 = vpack.i.b16 %v1172_v37, %v1171_v34  ;;  %v1199_v42 = vcombine.high %v1169_v35, %v4838_v38  ;;  %v1206_v39 = vrot.slane %v1169_v35, %v4843_v44 }
 0x3a1   : > { %v1164_v43 = vpop.permute.xlu1 %1163  ;;  %v1154_v45 = vpop.permute.xlu0 %1153 }
 0x3a2   : > { %v1177_v47 = vpack.i.b16 %v1164_v43, %v1160_v33  ;;  %v1180_v24 = vshrl.u32 %v1164_v43, 16  ;;  %v1265_v48 = vcombine.high %v1173_v41, %v4838_v38  ;;  %v1213_v50 = vrot.slane %v1199_v42, %v4843_v44 }
 0x3a3   : > { %v1272_v51 = vrot.slane %v1173_v41, %v4843_v44  ;;  %v1187_v53 = vshrl.u32 %v1154_v45, 16 }
 0x3a4   : > { %v1181_v40 = vpack.i.b16 %v1180_v24, %v1179_v46  ;;  %v1214_v49 = vcombine.high %v1177_v47, %v4838_v38  ;;  %v1221_v36 = vrot.slane %v1177_v47, %v4843_v44  ;;  %v1279_v59 = vrot.slane %v1265_v48, %v4843_v44 }
 0x3a5   : > { %v1162_v2 = vpop.permute.xlu0 %1161 }
 0x3a6   : > { %v1158_v54 = vpop.permute.xlu1 %1157  ;;  %v1228_v55 = vrot.slane %v1214_v49, %v4843_v44  ;;  %v1229_v56 = vcombine.low %v1206_v39, %v1221_v36  ;;  %v1230_v57 = vcombine.high %v1206_v39, %v1221_v36  ;;  %v1280_v58 = vcombine.high %v1181_v40, %v4838_v38 }
 0x3a7   : > { %v1287_v60 = vrot.slane %v1181_v40, %v4843_v44  ;;  %v1185_v0 = vpack.i.b16 %v1158_v54, %v1154_v45  ;;  %v1188_v1 = vshrl.u32 %v1158_v54, 16  ;;  %v1195_v23 = vshrl.u32 %v1162_v2, 16 }
 0x3a8   : > { %v1237_v3 = vrot.slane %v1229_v56, %v4850_v52  ;;  %v1244_v5 = vrot.slane %v1230_v57, %v4850_v52  ;;  %v1245_v8 = vcombine.low %v1213_v50, %v1228_v55  ;;  %v1246_v9 = vcombine.high %v1213_v50, %v1228_v55 }
 0x3a9   : > { %v1294_v10 = vrot.slane %v1280_v58, %v4843_v44  ;;  %v1295_v11 = vcombine.low %v1272_v51, %v1287_v60  ;;  %v1296_v15 = vcombine.high %v1272_v51, %v1287_v60  ;;  %v1189_v16 = vpack.i.b16 %v1188_v1, %v1187_v53 }
 0x3aa   : > { %v1253_v20 = vrot.slane %v1245_v8, %v4850_v52  ;;  %v1166_v27 = vpop.permute.xlu1 %1165  ;;  %v1260_v32 = vrot.slane %v1246_v9, %v4850_v52  ;;  %v1463_v35 = vcombine.low %v1237_v3, %v1244_v5  ;;  %v3854_v41 = vcombine.high %v1237_v3, %v1244_v5 }
 0x3ab   : > { %v1311_v33 = vcombine.low %v1279_v59, %v1294_v10  ;;  %v1312_v34 = vcombine.high %v1279_v59, %v1294_v10  ;;  %v1303_v37 = vrot.slane %v1295_v11, %v4850_v52  ;;  %v1331_v42 = vcombine.high %v1185_v0, %v4838_v38 }
 0x3ac   : > { %v1397_v43 = vcombine.high %v1189_v16, %v4838_v38  ;;  %v1310_v45 = vrot.slane %v1296_v15, %v4850_v52  ;;  %v1338_v46 = vrot.slane %v1185_v0, %v4843_v44  ;;  %v1193_v47 = vpack.i.b16 %v1166_v27, %v1162_v2 }
 0x3ad   : > { %v1196_v24 = vshrl.u32 %v1166_v27, 16  ;;  %v4975_v48 = vrot.slane %v1311_v33, %v4850_v52  ;;  %v1326_v39 = vrot.slane %v1312_v34, %v4850_v52  ;;  %v1345_v40 = vrot.slane %v1331_v42, %v4843_v44 }
 0x3ae   : > { %v1404_v49 = vrot.slane %v1189_v16, %v4843_v44  ;;  %v1346_v50 = vcombine.high %v1193_v47, %v4838_v38  ;;  %v1353_v51 = vrot.slane %v1193_v47, %v4843_v44  ;;  %v1479_v53 = vcombine.low %v1253_v20, %v1260_v32 }
 0x3af   : > { %v1197_v36 = vpack.i.b16 %v1196_v24, %v1195_v23  ;;  %v1411_v54 = vrot.slane %v1397_v43, %v4843_v44  ;;  %v1470_v55 = vrot.slane %v1463_v35, %v4843_v44  ;;  %v1478_v56 = vrot.slane %v3854_v41, %v4843_v44 }
 0x3b0   : > { %v3855_v57 = vcombine.high %v1253_v20, %v1260_v32  ;;  %v1360_v58 = vrot.slane %v1346_v50, %v4843_v44  ;;  %v1361_v59 = vcombine.low %v1338_v46, %v1353_v51  ;;  %v1362_v60 = vcombine.high %v1338_v46, %v1353_v51 }
 0x3b1   : > { %v1412_v0 = vcombine.high %v1197_v36, %v4838_v38  ;;  %v1419_v1 = vrot.slane %v1197_v36, %v4843_v44  ;;  %v1486_v2 = vrot.slane %v1479_v53, %v4843_v44  ;;  %v1513_v3 = vcombine.low %v1303_v37, %v1310_v45 }
 0x3b2   : > { %v3856_v5 = vcombine.high %v1303_v37, %v1310_v45  ;;  %v1369_v8 = vrot.slane %v1361_v59, %v4850_v52  ;;  %v1376_v9 = vrot.slane %v1362_v60, %v4850_v52  ;;  %v1377_v10 = vcombine.low %v1345_v40, %v1360_v58 }
 0x3b3   : > { %v1378_v11 = vcombine.high %v1345_v40, %v1360_v58  ;;  %v1426_v15 = vrot.slane %v1412_v0, %v4843_v44  ;;  %v1427_v16 = vcombine.low %v1404_v49, %v1419_v1  ;;  %v1428_v20 = vcombine.high %v1404_v49, %v1419_v1 }
 0x3b4   : > { %v1494_v23 = vrot.slane %v3855_v57, %v4843_v44  ;;  %v1385_v27 = vrot.slane %v1377_v10, %v4850_v52  ;;  %v1563_v33 = vcombine.low %v1369_v8, %v1376_v9  ;;  %v3858_v34 = vcombine.high %v1369_v8, %v1376_v9 }
 0x3b5   : > { %v1392_v32 = vrot.slane %v1378_v11, %v4850_v52  ;;  %v1435_v35 = vrot.slane %v1427_v16, %v4850_v52  ;;  %v1442_v37 = vrot.slane %v1428_v20, %v4850_v52  ;;  %v1443_v41 = vcombine.low %v1411_v54, %v1426_v15 }
 0x3b6   : > { %v1444_v42 = vcombine.high %v1411_v54, %v1426_v15  ;;  %v1570_v43 = vrot.slane %v1563_v33, %v4843_v44  ;;  %v1578_v45 = vrot.slane %v3858_v34, %v4843_v44  ;;  %v1503_v53 = vcombine.low %v1486_v2, %v1494_v23 }
 0x3b7   : > { %v1579_v46 = vcombine.low %v1385_v27, %v1392_v32  ;;  %v3859_v47 = vcombine.high %v1385_v27, %v1392_v32  ;;  %v1451_v24 = vrot.slane %v1443_v41, %v4850_v52  ;;  %v1613_v49 = vcombine.low %v1435_v35, %v1442_v37 }
 0x3b8   : > { %v1458_v40 = vrot.slane %v1444_v42, %v4850_v52  ;;  %v3860_v36 = vcombine.high %v1435_v35, %v1442_v37  ;;  %v1520_v57 = vrot.slane %v1513_v3, %v4843_v44  ;;  %v1495_v0 = vcombine.low %v1470_v55, %v1478_v56 }
 0x3b9   : > { %v1586_v50 = vrot.slane %v1579_v46, %v4843_v44  ;;  %v1594_v51 = vrot.slane %v3859_v47, %v4843_v44  ;;  %v1620_v54 = vrot.slane %v1613_v49, %v4843_v44  ;;  %v1528_v1 = vrot.slane %v3856_v5, %v4843_v44 }
 0x3ba   : > { %v1628_v58 = vrot.slane %v3860_v36, %v4843_v44  ;;  %v1629_v59 = vcombine.low %v1451_v24, %v1458_v40  ;;  %v3861_v60 = vcombine.high %v1451_v24, %v1458_v40  ;;  %v1529_v8 = vcombine.low %v4975_v48, %v1326_v39 }
 0x3bb   : > { %v3857_v9 = vcombine.high %v4975_v48, %v1326_v39  ;;  %v1595_v10 = vcombine.low %v1570_v43, %v1578_v45  ;;  %v1603_v11 = vcombine.low %v1586_v50, %v1594_v51  ;;  %v1510_v2 = vrot.slane %v1503_v53, %v4850_v52 }
 0x3bc   : > { %v1636_v15 = vrot.slane %v1629_v59, %v4843_v44  ;;  %v1536_v3 = vrot.slane %v1529_v8, %v4843_v44  ;;  %v1644_v16 = vrot.slane %v3861_v60, %v4843_v44  ;;  %v1545_v23 = vcombine.low %v1520_v57, %v1528_v1 }
 0x3bd   : > { %v1544_v20 = vrot.slane %v3857_v9, %v4843_v44  ;;  %v1610_v55 = vrot.slane %v1603_v11, %v4850_v52  ;;  %v1645_v56 = vcombine.low %v1620_v54, %v1628_v58  ;;  %v1502_v5 = vrot.slane %v1495_v0, %v4850_v52 }
 0x3be   : > { %v1653_v27 = vcombine.low %v1636_v15, %v1644_v16  ;;  %v1602_v39 = vrot.slane %v1595_v10, %v4850_v52  ;;  %v1552_v35 = vrot.slane %v1545_v23, %v4850_v52  ;;  %v3947_v23 = vld [vmem:[%s4767_s15 + $0x18] sm:$0xff]  }
 0x3bf   : > { %v1553_v48 = vcombine.low %v1536_v3, %v1544_v20  ;;  %v1511_v32 = vcombine.low %v1502_v5, %v1510_v2  ;;  %v1652_v33 = vrot.slane %v1645_v56, %v4850_v52  ;;  %v1512_v54 = vcombine.high %v1502_v5, %v1510_v2  ;;  %v3914_v20 = vld [vmem:[%s4767_s15] sm:$0xff]  }
 0x3c0   : > { %v1660_v34 = vrot.slane %v1653_v27, %v4850_v52  ;;  %v1611_v41 = vcombine.low %v1602_v39, %v1610_v55  ;;  %v1612_v10 = vcombine.high %v1602_v39, %v1610_v55  ;;  %v3915_v13 = vunpack.c.l.bf16 %v3914_v20 }
 0x3c1   : > { %v1560_v37 = vrot.slane %v1553_v48, %v4850_v52  ;;  %v1666_v45 = vshrl.u32 %v1511_v32, 16  ;;  %v1672_v1 = vshrl.u32 %v1512_v54, 16  ;;  %v3916_v55 = vunpack.c.h.bf16 %v3914_v20 }
 0x3c2   : > { %v1661_v42 = vcombine.low %v1652_v33, %v1660_v34  ;;  %v1678_v49 = vshrl.u32 %v1611_v41, 16  ;;  %v1662_v9 = vcombine.high %v1652_v33, %v1660_v34  ;;  %v1684_v3 = vshrl.u32 %v1612_v10, 16 }
 0x3c3   : > { %v1561_v43 = vcombine.low %v1552_v35, %v1560_v37  ;;  %v1562_v53 = vcombine.high %v1552_v35, %v1560_v37  ;;  %v3928_v48 = vunpack.c.h.bf16 %v3947_v23  ;;  %v3946_v35 = vld [vmem:[%s4767_s15 + $0x10] sm:$0xff]   ;;  %v3927_v6 = vunpack.c.l.bf16 %v3947_v23 }
 0x3c4   : > { %v1679_v46 = vshrl.u32 %v1661_v42, 16  ;;  %v1677_v40 = vpack.i.b16 %v1661_v42, %v1611_v41  ;;  %v1685_v11 = vshrl.u32 %v1662_v9, 16  ;;  %v1683_v2 = vpack.i.b16 %v1662_v9, %v1612_v10 }
 0x3c5   : > { %v1665_v47 = vpack.i.b16 %v1561_v43, %v1511_v32  ;;  %v1667_v24 = vshrl.u32 %v1561_v43, 16  ;;  %v1673_v59 = vshrl.u32 %v1562_v53, 16  ;;  %v1671_v60 = vpack.i.b16 %v1562_v53, %v1512_v54 }
 0x3c6   : > { %v1680_v51 = vpack.i.b16 %v1679_v46, %v1678_v49  ;;  %v2278_v58 = vsel %vm2267_vm1, %v1677_v40, 0  ;;  %v1686_v12 = vpack.i.b16 %v1685_v11, %v1684_v3  ;;  %v2400_v30 = vsel %vm2267_vm1, %v1683_v2, 0  ;;  %v3948_v11 = vld [vmem:[%s4767_s15 + $0x20] sm:$0xff]  }
 0x3c7   : > { %4066 = vmatprep.subr.msk.bf16.mxu1 %vm2267_vm1, %v1665_v47  ;;  %v2275_v36 = vsel %vm2267_vm1, %v1665_v47, 0  ;;  %v1668_v50 = vpack.i.b16 %v1667_v24, %v1666_v45  ;;  %v1674_v8 = vpack.i.b16 %v1673_v59, %v1672_v1  ;;  %v2397_v15 = vsel %vm2267_vm1, %v1671_v60, 0  ;;  %v3949_v59 = vld [vmem:[%s4767_s15 + $0x28] sm:$0xff]  }
 0x3c8   : > { %3991 = vmatpush3.bf16.xpose.msra.mxu1 %v2275_v36  ;;  %v2339_v0 = vsel %vm2267_vm1, %v1680_v51, 0  ;;  %v2461_v61 = vsel %vm2267_vm1, %v1686_v12, 0  ;;  %v3924_v43 = vunpack.c.h.bf16 %v3946_v35  ;;  %v3923_v36 = vunpack.c.l.bf16 %v3946_v35 }
 0x3c9   : > { %4068 = vmatprep.subr.msk.bf16.mxu0 %vm2267_vm1, %v1668_v50  ;;  %v2336_v57 = vsel %vm2267_vm1, %v1668_v50, 0  ;;  %4067 = vmatprep.subr.msk.bf16.mxu1 %vm2267_vm1, %v1677_v40  ;;  %v2458_v62 = vsel %vm2267_vm1, %v1674_v8, 0  ;;  %v3935_v9 = vunpack.c.l.bf16 %v3949_v59 }
 0x3ca   : > { %3999 = vmatpush3.bf16.xpose.msra.mxu0 %v2336_v57 }
 0x3cb   : > { %4069 = vmatprep.subr.msk.bf16.mxu0 %vm2267_vm1, %v1680_v51 }
 0x3d0   : > { %3993 = vmatpush3.bf16.xpose.msra.mxu1 %v2278_v58 }
 0x3d1   : > { %4070 = vmatprep.subr.msk.bf16.mxu1 %vm2267_vm1, %v1671_v60 }
 0x3d2   : > { %4001 = vmatpush3.bf16.xpose.msra.mxu0 %v2339_v0 }
 0x3d3   : > { %4072 = vmatprep.subr.msk.bf16.mxu0 %vm2267_vm1, %v1674_v8 }
 0x3d7   : > { %3995 = vmatmul.mubr.msk.bf16.vlgmr.msra.gmra.mrb[0].mxu1 %vm2267_vm1, %v1141_v17 }
 0x3d8   : > { %4007 = vmatpush3.bf16.xpose.msra.mxu1 %v2397_v15  ;;  %4010 = vmatprep.mubr.msk.bf16.mxu1 %vm2267_vm1, %v1135_v4  ;;  %v2231_v4 = vld [vmem:[%s406_s0] sm:$0x1]  ;;  %v3936_v15 = vunpack.c.h.bf16 %v3949_v59 }
 0x3d9   : > { %4003 = vmatmul.mubr.msk.bf16.vlgmr.msra.gmra.mrb[8].mxu0 %vm2267_vm1, %v4949_v25  ;;  %4071 = vmatprep.subr.msk.bf16.mxu1 %vm2267_vm1, %v1683_v2  ;;  %v3945_v25 = vld [vmem:[%s4767_s15 + $0x8] sm:$0xff]  }
 0x3da   : > { %4015 = vmatpush3.bf16.xpose.msra.mxu0 %v2458_v62  ;;  %4018 = vmatprep.mubr.msk.bf16.mxu0 %vm2267_vm1, %v4938_v14  ;;  %v2232_v14 = vunpack.c.l.bf16 %v2231_v4  ;;  %v3919_v63 = vunpack.c.l.bf16 %v3945_v25  ;;  %v3920_v27 = vunpack.c.h.bf16 %v3945_v25  ;;  %v3951_v62 = vld [vmem:[%s4767_s15 + $0x38] sm:$0xff]   ;;  %v3931_v4 = vunpack.c.l.bf16 %v3948_v11  ;;  %v3950_v25 = vld [vmem:[%s4767_s15 + $0x30] sm:$0xff]   ;;  %s4479_s15 = smov 48  }
 0x3db   : > { %4073 = vmatprep.subr.msk.bf16.mxu0 %vm2267_vm1, %v1686_v12  ;;  %v3932_v12 = vunpack.c.h.bf16 %v3948_v11 }
 0x3dc   : > { %v3870_v17 = vadd.f32 -1.0, %v2232_v14 }
 0x3de   : > { %v2234_v16 = vmul.f32 1e+09, %v3870_v17 }
 0x3e0   : > { %4009 = vmatpush3.bf16.xpose.msra.mxu1 %v2400_v30 }
 0x3e2   : > { %4017 = vmatpush3.bf16.xpose.msra.mxu0 %v2461_v61 }
 0x3e7   : > { %4011 = vmatmul.mubr.msk.bf16.vlgmr.msra.gmra.mrb[4].mxu1 %vm2267_vm1, %v1147_v22  ;;  %v5064_v22 = vrot.slane %v2234_v16, %v502_v7  ;;  %v3944_v16 = vunpack.c.h.bf16 %v3951_v62 }
 0x3e9   : > { %4019 = vmatmul.mubr.msk.bf16.vlgmr.msra.gmra.mrb[12].mxu0 %vm2267_vm1, %v4951_v26 }
 0x4aa   : > { %v3996_v26 = vpop.f32.mrb[0].mxu1 }
 0x4ab   : > { %v2323_v56 = vadd.f32 %v3996_v26, %v3919_v63  ;;  %v2314_v5 = vpop.f32.mrb[1].mxu1 }
 0x4ac   : > { %v2315_v39 = vadd.f32 %v3915_v13, %v2314_v5  ;;  %v3997_v32 = vpop.f32.mrb[2].mxu1  ;;  %v4004_v33 = vpop.f32.mrb[8].mxu0  ;;  %v3940_v13 = vunpack.c.h.bf16 %v3950_v25 }
 0x4ad   : > { %v2317_v34 = vpop.f32.mrb[3].mxu1  ;;  %v2375_v37 = vpop.f32.mrb[9].mxu0  ;;  %v5069_v41 = vadd.f32 %v5064_v22, %v2323_v56  ;;  %v2326_v45 = vadd.f32 %v3997_v32, %v3920_v27  ;;  %v2384_v57 = vadd.f32 %v4004_v33, %v3927_v6  ;;  %v3943_v56 = vunpack.c.l.bf16 %v3951_v62 }
 0x4ae   : > { %v2318_v7 = vadd.f32 %v3916_v55, %v2317_v34  ;;  %v4005_v42 = vpop.f32.mrb[10].mxu0  ;;  %v5074_v40 = vadd.f32 %v5064_v22, %v2315_v39  ;;  %v2376_v60 = vadd.f32 %v3923_v36, %v2375_v37 }
 0x4af   : > { %v2387_v46 = vadd.f32 %v4005_v42, %v3928_v48  ;;  %v2378_v47 = vpop.f32.mrb[11].mxu0  ;;  %v2539_v24 = vsel %vm2532_vm2, %v5069_v41, -inf  ;;  %v5087_v58 = vadd.f32 %v5064_v22, %v2326_v45  ;;  %v5098_v10 = vadd.f32 %v5064_v22, %v2384_v57 }
 0x4b0   : > { %2540 = vmax.xlane.f32.xlu0 %v2539_v24  ;;  %v5077_v49 = vadd.f32 %v5064_v22, %v2318_v7  ;;  %v2379_v50 = vadd.f32 %v3924_v43, %v2378_v47  ;;  %v2533_v54 = vsel %vm2532_vm2, %v5074_v40, -inf  ;;  %v5105_v30 = vadd.f32 %v5064_v22, %v2376_v60 }
 0x4b1   : > { %v5082_v53 = vadd.f32 %v5064_v22, %v2387_v46  ;;  %v2542_v8 = vsel %vm2532_vm2, %v5087_v58, -inf  ;;  %v2551_v17 = vsel %vm2532_vm2, %v5098_v10, -inf  ;;  %v3939_v46 = vunpack.c.l.bf16 %v3950_v25 }
 0x4b2   : > { %v2536_v51 = vsel %vm2532_vm2, %v5077_v49, -inf  ;;  %v5093_v1 = vadd.f32 %v5064_v22, %v2379_v50  ;;  %v2545_v48 = vsel %vm2532_vm2, %v5105_v30, -inf }
 0x4b3   : > { %2537 = vmax.xlane.f32.xlu1 %v2536_v51  ;;  %v2554_v0 = vsel %vm2532_vm2, %v5082_v53, -inf }
 0x4b4   : > { %2534 = vmax.xlane.f32.xlu0 %v2533_v54  ;;  %v2548_v3 = vsel %vm2532_vm2, %v5093_v1, -inf }
 0x4b7   : > { %2555 = vmax.xlane.f32.xlu1 %v2554_v0 }
 0x4b8   : > { %2543 = vmax.xlane.f32.xlu0 %v2542_v8 }
 0x4ba   : > { %v4012_v2 = vpop.f32.mrb[4].mxu1 }
 0x4bb   : > { %v2445_v61 = vadd.f32 %v4012_v2, %v3935_v9  ;;  %v2436_v14 = vpop.f32.mrb[5].mxu1  ;;  %2549 = vmax.xlane.f32.xlu1 %v2548_v3 }
 0x4bc   : > { %v4013_v20 = vpop.f32.mrb[6].mxu1  ;;  %v4020_v63 = vpop.f32.mrb[12].mxu0  ;;  %2552 = vmax.xlane.f32.xlu0 %v2551_v17  ;;  %v2437_v39 = vadd.f32 %v3931_v4, %v2436_v14 }
 0x4bd   : > { %v2448_v26 = vadd.f32 %v4013_v20, %v3936_v15  ;;  %v2439_v23 = vpop.f32.mrb[7].mxu1  ;;  %v2497_v55 = vpop.f32.mrb[13].mxu0  ;;  %v5116_v35 = vadd.f32 %v5064_v22, %v2445_v61  ;;  %v2506_v45 = vadd.f32 %v4020_v63, %v3943_v56 }
 0x4be   : > { %v2440_v5 = vadd.f32 %v3932_v12, %v2439_v23  ;;  %v4021_v27 = vpop.f32.mrb[14].mxu0  ;;  %v5132_v24 = vadd.f32 %v5064_v22, %v2437_v39  ;;  %v2498_v50 = vadd.f32 %v3939_v46, %v2497_v55 }
 0x4bf   : > { %v2509_v32 = vadd.f32 %v4021_v27, %v3944_v16  ;;  %v2500_v33 = vpop.f32.mrb[15].mxu0  ;;  %v5113_v34 = vadd.f32 %v5064_v22, %v2448_v26  ;;  %v2563_v47 = vsel %vm2532_vm2, %v5116_v35, -inf  ;;  %v5139_v57 = vadd.f32 %v5064_v22, %v2506_v45 }
 0x4c0   : > { %v2501_v37 = vadd.f32 %v3940_v13, %v2500_v33  ;;  %2546 = vmax.xlane.f32.xlu0 %v2545_v48  ;;  %v5121_v7 = vadd.f32 %v5064_v22, %v2440_v5  ;;  %v2557_v51 = vsel %vm2532_vm2, %v5132_v24, -inf  ;;  %v5144_v59 = vadd.f32 %v5064_v22, %v2498_v50 }
 0x4c1   : > { %v2566_v6 = vsel %vm2532_vm2, %v5113_v34, -inf  ;;  %v5124_v42 = vadd.f32 %v5064_v22, %v2509_v32  ;;  %v2575_v54 = vsel %vm2532_vm2, %v5139_v57, -inf }
 0x4c2   : > { %2567 = vmax.xlane.f32.xlu1 %v2566_v6  ;;  %v5127_v43 = vadd.f32 %v5064_v22, %v2501_v37  ;;  %v2560_v36 = vsel %vm2532_vm2, %v5121_v7, -inf  ;;  %v2569_v60 = vsel %vm2532_vm2, %v5144_v59, -inf }
 0x4c3   : > { %v2578_v0 = vsel %vm2532_vm2, %v5124_v42, -inf }
 0x4c4   : > { %2564 = vmax.xlane.f32.xlu0 %v2563_v47  ;;  %v2572_v22 = vsel %vm2532_vm2, %v5127_v43, -inf }
 0x4c6   : > { %2561 = vmax.xlane.f32.xlu1 %v2560_v36 }
 0x4c8   : > { %2558 = vmax.xlane.f32.xlu0 %v2557_v51  ;;  %v1707_v51 = vshrl.u32 %v4819_v21, 16 }
 0x4cc   : > { %2576 = vmax.xlane.f32.xlu0 %v2575_v54 }
 0x4d0   : > { %2570 = vmax.xlane.f32.xlu0 %v2569_v60 }
 0x4d7   : > { %1695 = vrot.lane.b32.xlu1 %v4819_v21, %s4471_s25 }
 0x4db   : > { %1699 = vrot.lane.b32.xlu1 %v4819_v21, %s4473_s24 }
 0x4e6   : > { %1691 = vrot.lane.b32.xlu0 %v4819_v21, %s4472_s21 }
 0x4ff   : > { %2579 = vmax.xlane.f32.xlu1 %v2578_v0 }
 0x503   : > { %2573 = vmax.xlane.f32.xlu1 %v2572_v22 }
 0x514   : > { %1693 = vrot.lane.b32.xlu1 %v4830_v31, %s4472_s21 }
 0x53d   : > { %v2541_v8 = vpop.xlane.xlu0 %2540 }
 0x53e   : > { %v2583_v9 = vsub.f32 %v5069_v41, %v2541_v8 }
 0x540   : > { %v2601_v11 = vmul.f32 1.442695, %v2583_v9  ;;  %v2538_v15 = vpop.xlane.xlu1 %2537 }
 0x541   : > { %v2535_v2 = vpop.xlane.xlu0 %2534  ;;  %v2582_v62 = vsub.f32 %v5077_v49, %v2538_v15 }
 0x542   : > { %4186 = vpow2.f32 %v2601_v11  ;;  %v2581_v3 = vsub.f32 %v5074_v40, %v2535_v2 }
 0x543   : > { %v2599_v17 = vmul.f32 1.442695, %v2582_v62 }
 0x544   : > { %v2597_v12 = vmul.f32 1.442695, %v2581_v3  ;;  %v5163_v61 = vpop.xlane.xlu1 %2555 }
 0x545   : > { %v2544_v4 = vpop.xlane.xlu0 %2543 }
 0x546   : > { %4188 = vpow2.f32 %v2597_v12  ;;  %v2584_v14 = vsub.f32 %v5087_v58, %v2544_v4 }
 0x548   : > { %v2603_v25 = vmul.f32 1.442695, %v2584_v14  ;;  %v5168_v41 = vpop.xlane.xlu1 %2549 }
 0x549   : > { %v5166_v16 = vpop.xlane.xlu0 %2552 }
 0x54a   : > { %4190 = vpow2.f32 %v2603_v25 }
 0x54b   : > { %4192 = vpow2.f32 %v2599_v17 }
 0x54c   : > { %v5170_v20 = vpop.eup %4186 }
 0x54d   : > { %v5172_v40 = vpop.xlane.xlu0 %2546  ;;  %v2635_v49 = vsel %vm2532_vm2, %v5170_v20, 0.0 }
 0x54e   : > { %2636 = vadd.xlane.f32.xlu0 %v2635_v49 }
 0x54f   : > { %v5176_v63 = vpop.xlane.xlu1 %2567 }
 0x550   : > { %v5178_v13 = vpop.eup %4188 }
 0x551   : > { %v5180_v58 = vpop.xlane.xlu0 %2564  ;;  %v2629_v26 = vsel %vm2532_vm2, %v5178_v13, 0.0 }
 0x552   : > { %2630 = vadd.xlane.f32.xlu1 %v2629_v26 }
 0x553   : > { %v5184_v23 = vpop.xlane.xlu1 %2561 }
 0x554   : > { %v5186_v55 = vpop.eup %4190 }
 0x555   : > { %v5188_v56 = vpop.xlane.xlu0 %2558  ;;  %v2638_v5 = vsel %vm2532_vm2, %v5186_v55, 0.0  ;;  %v5192_v27 = vpop.eup %4192 }
 0x556   : > { %2639 = vadd.xlane.f32.xlu0 %v2638_v5  ;;  %v2632_v32 = vsel %vm2532_vm2, %v5192_v27, 0.0 }
 0x557   : > { %v1696_v48 = vpop.permute.xlu1 %1695 }
 0x558   : > { %v1715_v46 = vshrl.u32 %v1696_v48, 16 }
 0x559   : > { %v5194_v39 = vpop.xlane.xlu0 %2576 }
 0x55a   : > { %2633 = vadd.xlane.f32.xlu0 %v2632_v32 }
 0x55b   : > { %v1700_v33 = vpop.permute.xlu1 %1699 }
 0x55c   : > { %v1713_v37 = vpack.i.b16 %v1700_v33, %v1696_v48  ;;  %v1716_v6 = vshrl.u32 %v1700_v33, 16 }
 0x55d   : > { %v5198_v45 = vpop.xlane.xlu0 %2570 }
 0x55e   : > { %v1717_v47 = vpack.i.b16 %v1716_v6, %v1715_v46  ;;  %v1750_v36 = vcombine.high %v1713_v37, %v4838_v38  ;;  %v1757_v0 = vrot.slane %v1713_v37, %v4843_v44 }
 0x560   : > { %v1764_v11 = vrot.slane %v1750_v36, %v4843_v44  ;;  %v1816_v15 = vcombine.high %v1717_v47, %v4838_v38  ;;  %v1823_v12 = vrot.slane %v1717_v47, %v4843_v44 }
 0x561   : > { %v1692_v50 = vpop.permute.xlu0 %1691 }
 0x562   : > { %v1705_v54 = vpack.i.b16 %v1692_v50, %v4819_v21  ;;  %v1708_v60 = vshrl.u32 %v1692_v50, 16  ;;  %v1830_v26 = vrot.slane %v1816_v15, %v4843_v44 }
 0x563   : > { %1701 = vrot.lane.b32.xlu1 %v4830_v31, %s4473_s24 }
 0x564   : > { %v1709_v22 = vpack.i.b16 %v1708_v60, %v1707_v51  ;;  %v1735_v8 = vcombine.high %v1705_v54, %v4838_v38  ;;  %v1742_v9 = vrot.slane %v1705_v54, %v4843_v44 }
 0x566   : > { %v1749_v2 = vrot.slane %v1735_v8, %v4843_v44  ;;  %v1765_v3 = vcombine.low %v1742_v9, %v1757_v0  ;;  %v1766_v62 = vcombine.high %v1742_v9, %v1757_v0  ;;  %v1801_v21 = vcombine.high %v1709_v22, %v4838_v38 }
 0x567   : > { %v1808_v4 = vrot.slane %v1709_v22, %v4843_v44 }
 0x568   : > { %v1773_v14 = vrot.slane %v1765_v3, %v4850_v52  ;;  %v1780_v17 = vrot.slane %v1766_v62, %v4850_v52  ;;  %v1781_v25 = vcombine.low %v1749_v2, %v1764_v11  ;;  %v1782_v49 = vcombine.high %v1749_v2, %v1764_v11 }
 0x569   : > { %v1815_v5 = vrot.slane %v1801_v21, %v4843_v44  ;;  %v1831_v48 = vcombine.low %v1808_v4, %v1823_v12  ;;  %v1832_v32 = vcombine.high %v1808_v4, %v1823_v12 }
 0x56a   : > { %v1789_v33 = vrot.slane %v1781_v25, %v4850_v52  ;;  %v1796_v37 = vrot.slane %v1782_v49, %v4850_v52  ;;  %v1999_v6 = vcombine.low %v1773_v14, %v1780_v17  ;;  %v3862_v46 = vcombine.high %v1773_v14, %v1780_v17 }
 0x56b   : > { %v1839_v47 = vrot.slane %v1831_v48, %v4850_v52  ;;  %v1846_v36 = vrot.slane %v1832_v32, %v4850_v52  ;;  %v1847_v50 = vcombine.low %v1815_v5, %v1830_v26  ;;  %v1848_v51 = vcombine.high %v1815_v5, %v1830_v26 }
 0x56c   : > { %v2006_v54 = vrot.slane %v1999_v6, %v4843_v44  ;;  %v2014_v60 = vrot.slane %v3862_v46, %v4843_v44  ;;  %v2015_v0 = vcombine.low %v1789_v33, %v1796_v37  ;;  %v3863_v22 = vcombine.high %v1789_v33, %v1796_v37 }
 0x56d   : > { %v1855_v8 = vrot.slane %v1847_v50, %v4850_v52  ;;  %v1862_v9 = vrot.slane %v1848_v51, %v4850_v52  ;;  %v2049_v11 = vcombine.low %v1839_v47, %v1846_v36  ;;  %v3864_v15 = vcombine.high %v1839_v47, %v1846_v36 }
 0x56e   : > { %v2022_v2 = vrot.slane %v2015_v0, %v4843_v44  ;;  %v2030_v3 = vrot.slane %v3863_v22, %v4843_v44  ;;  %v2031_v62 = vcombine.low %v2006_v54, %v2014_v60  ;;  %v2585_v17 = vsub.f32 %v5105_v30, %v5172_v40 }
 0x56f   : > { %v2065_v21 = vcombine.low %v1855_v8, %v1862_v9  ;;  %v3865_v12 = vcombine.high %v1855_v8, %v1862_v9  ;;  %v2056_v4 = vrot.slane %v2049_v11, %v4843_v44  ;;  %v2064_v14 = vrot.slane %v3864_v15, %v4843_v44 }
 0x570   : > { %1697 = vrot.lane.b32.xlu0 %v4830_v31, %s4471_s25  ;;  %v2039_v25 = vcombine.low %v2022_v2, %v2030_v3  ;;  %v2038_v48 = vrot.slane %v2031_v62, %v4850_v52  ;;  %v2588_v33 = vsub.f32 %v5082_v53, %v5163_v61  ;;  %v2605_v6 = vmul.f32 1.442695, %v2585_v17  ;;  %s4480_s25 = smov [#allocation10]  }
 0x571   : > { %v2072_v49 = vrot.slane %v2065_v21, %v4843_v44  ;;  %v2080_v26 = vrot.slane %v3865_v12, %v4843_v44  ;;  %v2081_v5 = vcombine.low %v2056_v4, %v2064_v14  ;;  %v2586_v50 = vsub.f32 %v5093_v1, %v5168_v41  ;;  %s4386_s21 = sshll.u32 %s4480_s25, 4  ;;  %s4387_s21 = int_to_ptr.vmem [resolvable:$false] %s4386_s21 }
 0x572   : > { %v2046_v32 = vrot.slane %v2039_v25, %v4850_v52  ;;  %v2611_v36 = vmul.f32 1.442695, %v2588_v33  ;;  %4194 = vpow2.f32 %v2605_v6  ;;  %v2590_v60 = vsub.f32 %v5121_v7, %v5184_v23  ;;  %s4388_s24 = scalar_lea.vmem %s4387_s21, 1024  ;;  %p4389_p7 = scmp.lt.s32.totalorder %s5525_s17, %s4387_s21 }
 0x573   : > { %v2089_v37 = vcombine.low %v2072_v49, %v2080_v26  ;;  %v2088_v40 = vrot.slane %v2081_v5, %v4850_v52  ;;  %v2607_v2 = vmul.f32 1.442695, %v2586_v50  ;;  %v2587_v1 = vsub.f32 %v5098_v10, %v5166_v16  ;;  %p4390_p3 = scmp.lt.s32.totalorder %s4388_s24, %s4382_s7 }
 0x574   : > { %v2047_v46 = vcombine.low %v2038_v48, %v2046_v32  ;;  %v2048_v30 = vcombine.high %v2038_v48, %v2046_v32  ;;  %4196 = vpow2.f32 %v2611_v36  ;;  %v2592_v7 = vsub.f32 %v5113_v34, %v5176_v63 }
 0x575   : > { %v2096_v47 = vrot.slane %v2089_v37, %v4850_v52  ;;  %v2615_v41 = vmul.f32 1.442695, %v2590_v60  ;;  %4198 = vpow2.f32 %v2607_v2  ;;  %v2609_v23 = vmul.f32 1.442695, %v2587_v1  ;;  %p4391_p5 = por %p4390_p3, %p4389_p7 }
 0x576   : > { %v2203_v0 = vshrl.u32 %v2047_v46, 16  ;;  %v2211_v53 = vshrl.u32 %v2048_v30, 16  ;;  %v2619_v3 = vmul.f32 1.442695, %v2592_v7  ;;  %v2589_v62 = vsub.f32 %v5132_v24, %v5188_v56 }
 0x577   : > { %v2097_v51 = vcombine.low %v2088_v40, %v2096_v47  ;;  %v2098_v54 = vcombine.high %v2088_v40, %v2096_v47  ;;  %4200 = vpow2.f32 %v2615_v41  ;;  %v2591_v10 = vsub.f32 %v5116_v35, %v5180_v58  ;;  %p4392_p9 = pnand %p4391_p5, %p4385_p4 }
 0x578   : > { %4202 = vpow2.f32 %v2609_v23  ;;  %v2613_v16 = vmul.f32 1.442695, %v2589_v62  ;;  %v2593_v4 = vsub.f32 %v5144_v59, %v5198_v45  ;;  %v2595_v35 = vsub.f32 %v5139_v57, %v5194_v39 }
 0x579   : > { %v2201_v61 = vpack.i.b16 %v2097_v51, %v2047_v46  ;;  %v2204_v22 = vshrl.u32 %v2097_v51, 16  ;;  %v5246_v8 = vpack.i.b16 %v2098_v54, %v2048_v30  ;;  %v2212_v9 = vshrl.u32 %v2098_v54, 16 }
 0x57a   : > { %4204 = vpow2.f32 %v2619_v3  ;;  %v2617_v63 = vmul.f32 1.442695, %v2591_v10  ;;  %v2621_v17 = vmul.f32 1.442695, %v2593_v4  ;;  %v2625_v5 = vmul.f32 1.442695, %v2595_v35 }
 0x57b   : > { %4022 = vmatprep.subr.bf16.mxu1 %v2201_v61  ;;  %v5248_v11 = vpack.i.b16 %v2204_v22, %v2203_v0  ;;  %v5250_v15 = vpack.i.b16 %v2212_v9, %v2211_v53  ;;  %4206 = vpow2.f32 %v2613_v16  ;;  %v3895_v30 = vmul.f32 -1.442695, %v4813_v18 }
 0x57c   : > { %4023 = vmatpush3.bf16.msra.mxu1 %v2201_v61  ;;  %v5258_v21 = vpop.eup %4194  ;;  %4208 = vpow2.f32 %v2617_v63  ;;  %v1723_v62 = vshrl.u32 %v4830_v31, 16 }
 0x57d   : > { %v2641_v12 = vsel %vm2532_vm2, %v5258_v21, 0.0  ;;  %4210 = vpow2.f32 %v2621_v17 }
 0x57e   : > { %v5264_v34 = vpop.eup %4196  ;;  %4212 = vpow2.f32 %v2625_v5 }
 0x57f   : > { %v5268_v24 = vpop.eup %4198  ;;  %v2650_v56 = vsel %vm2532_vm2, %v5264_v34, 0.0 }
 0x580   : > { %v2644_v49 = vsel %vm2532_vm2, %v5268_v24, 0.0 }
 0x581   : > { %v5272_v14 = vpop.eup %4200 }
 0x582   : > { %v5276_v25 = vpop.eup %4202  ;;  %v2656_v59 = vsel %vm2532_vm2, %v5272_v14, 0.0 }
 0x583   : > { %v2647_v39 = vsel %vm2532_vm2, %v5276_v25, 0.0 }
 0x584   : > { %v5282_v45 = vpop.eup %4204 }
 0x585   : > { %v2662_v32 = vsel %vm2532_vm2, %v5282_v45, 0.0  ;;  %v5290_v33 = vpop.eup %4206 }
 0x586   : > { %v2653_v46 = vsel %vm2532_vm2, %v5290_v33, 0.0 }
 0x587   : > { %2642 = vadd.xlane.f32.xlu1 %v2641_v12 }
 0x58b   : > { %2651 = vadd.xlane.f32.xlu1 %v2650_v56 }
 0x58c   : > { %v2580_v58 = vpop.xlane.xlu1 %2579 }
 0x58d   : > { %v2596_v26 = vsub.f32 %v5124_v42, %v2580_v58  ;;  %v3896_v42 = vmul.f32 -1.442695, %v4815_v19 }
 0x58f   : > { %2645 = vadd.xlane.f32.xlu0 %v2644_v49  ;;  %2657 = vadd.xlane.f32.xlu1 %v2656_v59  ;;  %v2627_v37 = vmul.f32 1.442695, %v2596_v26 }
 0x590   : > { %v2574_v48 = vpop.xlane.xlu1 %2573 }
 0x591   : > { %v2594_v57 = vsub.f32 %v5127_v43, %v2574_v48  ;;  %v5295_v43 = vpop.eup %4208 }
 0x592   : > { %v2659_v40 = vsel %vm2532_vm2, %v5295_v43, 0.0  ;;  %v5300_v47 = vpop.eup %4210 }
 0x593   : > { %v2623_v6 = vmul.f32 1.442695, %v2594_v57  ;;  %2648 = vadd.xlane.f32.xlu0 %v2647_v39  ;;  %2663 = vadd.xlane.f32.xlu1 %v2662_v32  ;;  %v5302_v36 = vpop.eup %4212  ;;  %v2665_v19 = vsel %vm2532_vm2, %v5300_v47, 0.0 }
 0x594   : > { %v2671_v54 = vsel %vm2532_vm2, %v5302_v36, 0.0  ;;  %v1694_v1 = vpop.permute.xlu1 %1693 }
 0x595   : > { %4214 = vpow2.f32 %v2623_v6  ;;  %v1724_v3 = vshrl.u32 %v1694_v1, 16  ;;  %v1721_v10 = vpack.i.b16 %v1694_v1, %v4830_v31 }
 0x596   : > { %4216 = vpow2.f32 %v2627_v37 }
 0x597   : > { %2654 = vadd.xlane.f32.xlu0 %v2653_v46  ;;  %4218 = vpow2.f32 %v3896_v42  ;;  %v1725_v12 = vpack.i.b16 %v1724_v3, %v1723_v62  ;;  %v1867_v4 = vcombine.high %v1721_v10, %v4838_v38  ;;  %v1874_v26 = vrot.slane %v1721_v10, %v4843_v44 }
 0x598   : > { %4220 = vpow2.f32 %v3895_v30 }
 0x599   : > { %v1933_v49 = vcombine.high %v1725_v12, %v4838_v38  ;;  %v1881_v57 = vrot.slane %v1867_v4, %v4843_v44  ;;  %v1940_v39 = vrot.slane %v1725_v12, %v4843_v44 }
 0x59b   : > { %2660 = vadd.xlane.f32.xlu0 %v2659_v40  ;;  %v1947_v46 = vrot.slane %v1933_v49, %v4843_v44 }
 0x59f   : > { %v5306_v50 = vpop.eup %4214  ;;  %2666 = vadd.xlane.f32.xlu0 %v2665_v19 }
 0x5a0   : > { %v2668_v51 = vsel %vm2532_vm2, %v5306_v50, 0.0  ;;  %v5310_v18 = vpop.eup %4216 }
 0x5a1   : > { %2669 = vadd.xlane.f32.xlu1 %v2668_v51  ;;  %v4219_v60 = vpop.eup %4218  ;;  %v2674_v0 = vsel %vm2532_vm2, %v5310_v18, 0.0 }
 0x5a2   : > { %v4221_v53 = vpop.eup %4220  ;;  %v3555_v61 = vadd.f32 1.0, %v4219_v60 }
 0x5a3   : > { %2672 = vadd.xlane.f32.xlu0 %v2671_v54  ;;  %v3554_v22 = vadd.f32 1.0, %v4221_v53 }
 0x5a4   : > { %4222 = vrcp.f32 %v3555_v61 }
 0x5a5   : > { %2675 = vadd.xlane.f32.xlu1 %v2674_v0  ;;  %4224 = vrcp.f32 %v3554_v22 }
 0x5ae   : > { %v4223_v9 = vpop.eup %4222 }
 0x5af   : > { %v4225_v2 = vpop.eup %4224 }
 0x5b6   : > { %3572 = vrot.lane.b32.xlu1 %v4223_v9, %s4474_s22 }
 0x5b9   : > { %3570 = vrot.lane.b32.xlu0 %v4225_v2, %s4474_s22 }
 0x5db   : > { %v2637_v7 = vpop.xlane.xlu0 %2636 }
 0x5df   : > { %v2631_v41 = vpop.xlane.xlu1 %2630 }
 0x5e0   : > { %4226 = vrcp.f32 %v2631_v41 }
 0x5e3   : > { %v2640_v23 = vpop.xlane.xlu0 %2639  ;;  %v1702_v63 = vpop.permute.xlu1 %1701 }
 0x5e4   : > { %v1732_v35 = vshrl.u32 %v1702_v63, 16 }
 0x5e7   : > { %v2634_v16 = vpop.xlane.xlu0 %2633 }
 0x5e8   : > { %4228 = vrcp.f32 %v2634_v16 }
 0x5e9   : > { %4230 = vrcp.f32 %v2640_v23 }
 0x5ea   : > { %v4227_v59 = vpop.eup %4226  ;;  %4232 = vrcp.f32 %v2637_v7 }
 0x5eb   : > { %v1698_v56 = vpop.permute.xlu0 %1697  ;;  %v2693_v40 = vmul.f32 %v4227_v59, %v5178_v13 }
 0x5ec   : > { %v1729_v58 = vpack.i.b16 %v1702_v63, %v1698_v56  ;;  %v1731_v17 = vshrl.u32 %v1698_v56, 16 }
 0x5ee   : > { %v1733_v5 = vpack.i.b16 %v1732_v35, %v1731_v17  ;;  %v1882_v48 = vcombine.high %v1729_v58, %v4838_v38  ;;  %v1889_v31 = vrot.slane %v1729_v58, %v4843_v44 }
 0x5f0   : > { %v1896_v32 = vrot.slane %v1882_v48, %v4843_v44  ;;  %v1897_v37 = vcombine.low %v1874_v26, %v1889_v31  ;;  %v1898_v6 = vcombine.high %v1874_v26, %v1889_v31  ;;  %v1948_v42 = vcombine.high %v1733_v5, %v4838_v38 }
 0x5f1   : > { %v1955_v30 = vrot.slane %v1733_v5, %v4843_v44 }
 0x5f2   : > { %v4229_v19 = vpop.eup %4228  ;;  %v1905_v51 = vrot.slane %v1897_v37, %v4850_v52  ;;  %v1912_v54 = vrot.slane %v1898_v6, %v4850_v52  ;;  %v1913_v60 = vcombine.low %v1881_v57, %v1896_v32  ;;  %v1914_v0 = vcombine.high %v1881_v57, %v1896_v32 }
 0x5f3   : > { %v1962_v53 = vrot.slane %v1948_v42, %v4843_v44  ;;  %v1963_v61 = vcombine.low %v1940_v39, %v1955_v30  ;;  %v1964_v22 = vcombine.high %v1940_v39, %v1955_v30  ;;  %v2694_v38 = vmul.f32 %v4229_v19, %v5192_v27  ;;  %v4231_v57 = vpop.eup %4230 }
 0x5f4   : > { %v1921_v9 = vrot.slane %v1913_v60, %v4850_v52  ;;  %v1928_v2 = vrot.slane %v1914_v0, %v4850_v52  ;;  %v2099_v1 = vcombine.low %v1905_v51, %v1912_v54  ;;  %v3866_v41 = vcombine.high %v1905_v51, %v1912_v54  ;;  %v4233_v54 = vpop.eup %4232 }
 0x5f5   : > { %v1971_v13 = vrot.slane %v1963_v61, %v4850_v52  ;;  %v1978_v23 = vrot.slane %v1964_v22, %v4850_v52  ;;  %v1979_v3 = vcombine.low %v1947_v46, %v1962_v53  ;;  %v1980_v62 = vcombine.high %v1947_v46, %v1962_v53 }
 0x5f6   : > { %v2106_v10 = vrot.slane %v2099_v1, %v4843_v44  ;;  %v2114_v16 = vrot.slane %v3866_v41, %v4843_v44  ;;  %v2115_v12 = vcombine.low %v1921_v9, %v1928_v2  ;;  %v3867_v63 = vcombine.high %v1921_v9, %v1928_v2 }
 0x5f7   : > { %v1987_v27 = vrot.slane %v1979_v3, %v4850_v52  ;;  %v1994_v4 = vrot.slane %v1980_v62, %v4850_v52  ;;  %v2149_v56 = vcombine.low %v1971_v13, %v1978_v23  ;;  %v3868_v35 = vcombine.high %v1971_v13, %v1978_v23 }
 0x5f8   : > { %v2709_v58 = vpack.c.bf16 %v2694_v38, %v2693_v40  ;;  %v2122_v17 = vrot.slane %v2115_v12, %v4843_v44  ;;  %v2130_v49 = vrot.slane %v3867_v63, %v4843_v44  ;;  %v2131_v39 = vcombine.low %v2106_v10, %v2114_v16 }
 0x5f9   : > { %v2165_v59 = vcombine.low %v1987_v27, %v1994_v4  ;;  %v3869_v26 = vcombine.high %v1987_v27, %v1994_v4  ;;  %v2156_v5 = vrot.slane %v2149_v56, %v4843_v44  ;;  %v2164_v48 = vrot.slane %v3868_v35, %v4843_v44 }
 0x5fa   : > { %4026 = vmatprep.mubr.msk.bf16.mxu1 %vm2532_vm2, %v2709_v58  ;;  %v2139_v31 = vcombine.low %v2122_v17, %v2130_v49  ;;  %v2138_v46 = vrot.slane %v2131_v39, %v4850_v52  ;;  %v2696_v60 = vmul.f32 %v4231_v57, %v5186_v55  ;;  %v2695_v53 = vmul.f32 %v4233_v54, %v5170_v20 }
 0x5fb   : > { %v2172_v32 = vrot.slane %v2165_v59, %v4843_v44  ;;  %v2180_v7 = vrot.slane %v3869_v26, %v4843_v44  ;;  %v2181_v37 = vcombine.low %v2156_v5, %v2164_v48 }
 0x5fc   : > { %v2146_v6 = vrot.slane %v2139_v31, %v4850_v52  ;;  %v2710_v22 = vpack.c.bf16 %v2696_v60, %v2695_v53 }
 0x5fd   : > { %v2189_v42 = vcombine.low %v2172_v32, %v2180_v7  ;;  %v2188_v30 = vrot.slane %v2181_v37, %v4850_v52 }
 0x5fe   : > { %v2147_v19 = vcombine.low %v2138_v46, %v2146_v6 }
 0x5ff   : > { %v2196_v40 = vrot.slane %v2189_v42, %v4850_v52 }
 0x600   : > { %v2219_v38 = vshrl.u32 %v2147_v19, 16 }
 0x601   : > { %v2197_v51 = vcombine.low %v2188_v30, %v2196_v40  ;;  %v2198_v17 = vcombine.high %v2188_v30, %v2196_v40 }
 0x603   : > { %v2217_v0 = vpack.i.b16 %v2197_v51, %v2147_v19  ;;  %v2220_v61 = vshrl.u32 %v2197_v51, 16 }
 0x605   : > { %4024 = vmatprep.subr.bf16.mxu1 %v2217_v0  ;;  %v2221_v9 = vpack.i.b16 %v2220_v61, %v2219_v38 }
 0x606   : > { %4025 = vmatpush3.bf16.msra.mxu1 %v2217_v0 }
 0x607   : > { %4030 = vmatprep.subr.bf16.mxu1 %v5248_v11 }
 0x609   : > { %4027 = vmatmul.mubr.msk.bf16.vlgmr.msra.gmra.mrb[8].mxu1 %vm2532_vm2, %v2710_v22 }
 0x60a   : > { %4031 = vmatpush3.bf16.msra.mxu1 %v5248_v11 }
 0x60b   : > { %4032 = vmatprep.subr.bf16.mxu1 %v2221_v9 }
 0x60e   : > { %4033 = vmatpush3.bf16.msra.mxu1 %v2221_v9 }
 0x60f   : > { %4038 = vmatprep.subr.bf16.mxu1 %v5246_v8 }
 0x614   : > { %v2643_v55 = vpop.xlane.xlu1 %2642 }
 0x615   : > { %4234 = vrcp.f32 %v2643_v55 }
 0x618   : > { %v2652_v2 = vpop.xlane.xlu1 %2651 }
 0x61c   : > { %v2646_v20 = vpop.xlane.xlu0 %2645  ;;  %v2658_v1 = vpop.xlane.xlu1 %2657 }
 0x61d   : > { %4236 = vrcp.f32 %v2646_v20 }
 0x61e   : > { %4238 = vrcp.f32 %v2652_v2 }
 0x61f   : > { %v4235_v3 = vpop.eup %4234 }
 0x620   : > { %v2649_v41 = vpop.xlane.xlu0 %2648  ;;  %v2664_v13 = vpop.xlane.xlu1 %2663  ;;  %v2697_v10 = vmul.f32 %v4235_v3, %v5258_v21  ;;  %v2148_v21 = vcombine.high %v2138_v46, %v2146_v6 }
 0x621   : > { %4240 = vrcp.f32 %v2649_v41 }
 0x622   : > { %4242 = vrcp.f32 %v2658_v1  ;;  %v2227_v6 = vshrl.u32 %v2148_v21, 16 }
 0x624   : > { %v2655_v23 = vpop.xlane.xlu0 %2654 }
 0x625   : > { %4244 = vrcp.f32 %v2655_v23  ;;  %v3897_v23 = vmul.f32 -1.442695, %v4824_v28 }
 0x626   : > { %4246 = vrcp.f32 %v2664_v13 }
 0x627   : > { %v4237_v11 = vpop.eup %4236 }
 0x628   : > { %v2661_v62 = vpop.xlane.xlu0 %2660  ;;  %v2698_v16 = vmul.f32 %v4237_v11, %v5268_v24  ;;  %v4239_v12 = vpop.eup %4238 }
 0x629   : > { %4248 = vrcp.f32 %v2661_v62  ;;  %v2700_v35 = vmul.f32 %v4239_v12, %v5264_v34  ;;  %v2225_v34 = vpack.i.b16 %v2198_v17, %v2148_v21  ;;  %v5388_v62 = vmul.f32 -1.442695, %v4826_v29 }
 0x62a   : > { %v2711_v63 = vpack.c.bf16 %v2698_v16, %v2697_v10 }
 0x62b   : > { %v4241_v27 = vpop.eup %4240 }
 0x62c   : > { %v2667_v4 = vpop.xlane.xlu0 %2666  ;;  %v4243_v56 = vpop.eup %4242  ;;  %v2699_v58 = vmul.f32 %v4241_v27, %v5276_v25  ;;  %4034 = vmatprep.mubr.msk.bf16.mxu1 %vm2532_vm2, %v2711_v63 }
 0x62d   : > { %4250 = vrcp.f32 %v2667_v4  ;;  %v2702_v48 = vmul.f32 %v4243_v56, %v5272_v14 }
 0x62e   : > { %v2670_v49 = vpop.xlane.xlu1 %2669  ;;  %v2712_v26 = vpack.c.bf16 %v2700_v35, %v2699_v58 }
 0x62f   : > { %v4245_v59 = vpop.eup %4244  ;;  %4252 = vrcp.f32 %v2670_v49 }
 0x630   : > { %v2673_v5 = vpop.xlane.xlu0 %2672  ;;  %v2701_v24 = vmul.f32 %v4245_v59, %v5290_v33  ;;  %v4247_v31 = vpop.eup %4246  ;;  %4035 = vmatmul.mubr.msk.bf16.vlgmr.msra.gmra.mrb[12].mxu1 %vm2532_vm2, %v2712_v26  ;;  %v2228_v33 = vshrl.u32 %v2198_v17, 16 }
 0x631   : > { %4254 = vrcp.f32 %v2673_v5  ;;  %4039 = vmatpush3.bf16.msra.mxu1 %v5246_v8  ;;  %v2704_v32 = vmul.f32 %v4247_v31, %v5282_v45 }
 0x632   : > { %v2676_v25 = vpop.xlane.xlu1 %2675  ;;  %v2713_v57 = vpack.c.bf16 %v2702_v48, %v2701_v24  ;;  %4040 = vmatprep.subr.bf16.mxu1 %v2225_v34  ;;  %v2229_v8 = vpack.i.b16 %v2228_v33, %v2227_v6 }
 0x633   : > { %v4249_v39 = vpop.eup %4248  ;;  %4256 = vrcp.f32 %v2676_v25 }
 0x634   : > { %v2703_v7 = vmul.f32 %v4249_v39, %v5295_v43  ;;  %4042 = vmatprep.mubr.msk.bf16.mxu1 %vm2532_vm2, %v2713_v57  ;;  %4258 = vpow2.f32 %v3897_v23 }
 0x635   : > { %4041 = vmatpush3.bf16.msra.mxu1 %v2225_v34  ;;  %4260 = vpow2.f32 %v5388_v62 }
 0x636   : > { %v2714_v14 = vpack.c.bf16 %v2704_v32, %v2703_v7  ;;  %4046 = vmatprep.subr.bf16.mxu1 %v5250_v15 }
 0x637   : > { %v4251_v37 = vpop.eup %4250 }
 0x638   : > { %4043 = vmatmul.mubr.msk.bf16.vlgmr.msra.gmra.mrb[16].mxu1 %vm2532_vm2, %v2714_v14  ;;  %v2705_v46 = vmul.f32 %v4251_v37, %v5300_v47 }
 0x639   : > { %v4253_v42 = vpop.eup %4252  ;;  %4047 = vmatpush3.bf16.msra.mxu1 %v5250_v15 }
 0x63a   : > { %v2706_v45 = vmul.f32 %v4253_v42, %v5306_v50  ;;  %4048 = vmatprep.subr.bf16.mxu1 %v2229_v8 }
 0x63b   : > { %v4255_v43 = vpop.eup %4254 }
 0x63c   : > { %v2715_v30 = vpack.c.bf16 %v2706_v45, %v2705_v46  ;;  %v2707_v19 = vmul.f32 %v4255_v43, %v5302_v36 }
 0x63d   : > { %v4257_v40 = vpop.eup %4256  ;;  %4049 = vmatpush3.bf16.msra.mxu1 %v2229_v8 }
 0x63e   : > { %v2708_v51 = vmul.f32 %v4257_v40, %v5310_v18  ;;  %4050 = vmatprep.mubr.msk.bf16.mxu1 %vm2532_vm2, %v2715_v30 }
 0x640   : > { %v2716_v54 = vpack.c.bf16 %v2708_v51, %v2707_v19 }
 0x642   : > { %4051 = vmatmul.mubr.msk.bf16.vlgmr.msra.gmra.mrb[20].mxu1 %vm2532_vm2, %v2716_v54 }
 0x6dc   : > { %v4028_v60 = vpop.f32.mrb[8].mxu1 }
 0x6dd   : > { %v2757_v15 = vpop.f32.mrb[9].mxu1 }
 0x6de   : > { %v4029_v0 = vpop.f32.mrb[10].mxu1 }
 0x6df   : > { %v2760_v47 = vpop.f32.mrb[11].mxu1 }
 0x703   : > { %v4036_v53 = vpop.f32.mrb[12].mxu1 }
 0x704   : > { %v2812_v50 = vpop.f32.mrb[13].mxu1 }
 0x705   : > { %v5382_v61 = vpop.f32.mrb[14].mxu1 }
 0x706   : > { %v5384_v22 = vpop.f32.mrb[15].mxu1 }
 0x70b   : > { %v4044_v38 = vpop.f32.mrb[16].mxu1 }
 0x70c   : > { %v3073_v36 = vcombine.low %v4028_v60, %v4044_v38  ;;  %v3074_v9 = vcombine.high %v4028_v60, %v4044_v38  ;;  %v2867_v18 = vpop.f32.mrb[17].mxu1  ;;  %v5420_v60 = vpop.eup %4258 }
 0x70d   : > { %v2937_v55 = vcombine.low %v2757_v15, %v2867_v18  ;;  %v2938_v2 = vcombine.high %v2757_v15, %v2867_v18  ;;  %v4045_v20 = vpop.f32.mrb[18].mxu1 }
 0x70e   : > { %v3141_v1 = vcombine.low %v4029_v0, %v4045_v20  ;;  %v3142_v41 = vcombine.high %v4029_v0, %v4045_v20  ;;  %v2870_v13 = vpop.f32.mrb[19].mxu1  ;;  %v3081_v10 = vrot.slane %v3073_v36, %v4843_v44  ;;  %v3088_v16 = vrot.slane %v3074_v9, %v4843_v44 }
 0x70f   : > { %v3005_v3 = vcombine.low %v2760_v47, %v2870_v13  ;;  %v3006_v11 = vcombine.high %v2760_v47, %v2870_v13  ;;  %v2945_v12 = vrot.slane %v2937_v55, %v4843_v44  ;;  %v2952_v63 = vrot.slane %v2938_v2, %v4843_v44 }
 0x710   : > { %v3149_v4 = vrot.slane %v3141_v1, %v4843_v44  ;;  %v5396_v56 = vrot.slane %v3142_v41, %v4843_v44 }
 0x711   : > { %v3013_v29 = vrot.slane %v3005_v3, %v4843_v44  ;;  %v3020_v17 = vrot.slane %v3006_v11, %v4843_v44 }
 0x715   : > { %v4052_v27 = vpop.f32.mrb[20].mxu1 }
 0x716   : > { %v3089_v28 = vcombine.low %v4036_v53, %v4052_v27  ;;  %v3090_v35 = vcombine.high %v4036_v53, %v4052_v27  ;;  %v2922_v58 = vpop.f32.mrb[21].mxu1 }
 0x717   : > { %v2953_v49 = vcombine.low %v2812_v50, %v2922_v58  ;;  %v2954_v59 = vcombine.high %v2812_v50, %v2922_v58  ;;  %v4053_v26 = vpop.f32.mrb[22].mxu1 }
 0x718   : > { %v3097_v21 = vrot.slane %v3089_v28, %v4843_v44  ;;  %v3104_v5 = vrot.slane %v3090_v35, %v4843_v44  ;;  %v3157_v24 = vcombine.low %v5382_v61, %v4053_v26  ;;  %v3158_v48 = vcombine.high %v5382_v61, %v4053_v26  ;;  %v2925_v31 = vpop.f32.mrb[23].mxu1 }
 0x719   : > { %v2961_v34 = vrot.slane %v2953_v49, %v4843_v44  ;;  %v2968_v25 = vrot.slane %v2954_v59, %v4843_v44  ;;  %v3021_v57 = vcombine.low %v5384_v22, %v2925_v31  ;;  %v3022_v39 = vcombine.high %v5384_v22, %v2925_v31 }
 0x71a   : > { %v3105_v32 = vcombine.low %v3081_v10, %v3097_v21  ;;  %v3106_v7 = vcombine.high %v3081_v10, %v3097_v21  ;;  %v3121_v33 = vcombine.low %v3088_v16, %v3104_v5  ;;  %v3122_v14 = vcombine.high %v3088_v16, %v3104_v5 }
 0x71b   : > { %v2969_v37 = vcombine.low %v2945_v12, %v2961_v34  ;;  %v2970_v6 = vcombine.high %v2945_v12, %v2961_v34  ;;  %v2985_v42 = vcombine.low %v2952_v63, %v2968_v25  ;;  %v2986_v8 = vcombine.high %v2952_v63, %v2968_v25 }
 0x71c   : > { %v3113_v46 = vrot.slane %v3105_v32, %v4850_v52  ;;  %v3120_v45 = vrot.slane %v3106_v7, %v4850_v52  ;;  %v3129_v43 = vrot.slane %v3121_v33, %v4850_v52  ;;  %v3136_v30 = vrot.slane %v3122_v14, %v4850_v52 }
 0x71d   : > { %v2977_v40 = vrot.slane %v2969_v37, %v4850_v52  ;;  %v2984_v19 = vrot.slane %v2970_v6, %v4850_v52  ;;  %v5415_v51 = vrot.slane %v2985_v42, %v4850_v52  ;;  %v5418_v54 = vrot.slane %v2986_v8, %v4850_v52 }
 0x71e   : > { %v3345_v15 = vcombine.low %v3113_v46, %v3120_v45  ;;  %v3891_v0 = vcombine.high %v3113_v46, %v3120_v45  ;;  %v3361_v47 = vcombine.low %v3129_v43, %v3136_v30  ;;  %v3892_v53 = vcombine.high %v3129_v43, %v3136_v30 }
 0x71f   : > { %v3209_v50 = vcombine.low %v2977_v40, %v2984_v19  ;;  %v3887_v61 = vcombine.high %v2977_v40, %v2984_v19  ;;  %v3225_v22 = vcombine.low %v5415_v51, %v5418_v54  ;;  %v3888_v38 = vcombine.high %v5415_v51, %v5418_v54 }
 0x720   : > { %v3165_v36 = vrot.slane %v3157_v24, %v4843_v44  ;;  %v3172_v9 = vrot.slane %v3158_v48, %v4843_v44  ;;  %v3029_v18 = vrot.slane %v3021_v57, %v4843_v44  ;;  %v3036_v55 = vrot.slane %v3022_v39, %v4843_v44 }
 0x721   : > { %v3352_v2 = vrot.slane %v3345_v15, %v4843_v44  ;;  %v3360_v20 = vrot.slane %v3891_v0, %v4843_v44  ;;  %v3368_v1 = vrot.slane %v3361_v47, %v4843_v44  ;;  %v3376_v41 = vrot.slane %v3892_v53, %v4843_v44 }
 0x722   : > { %v3173_v13 = vcombine.low %v3149_v4, %v3165_v36  ;;  %v3174_v23 = vcombine.high %v3149_v4, %v3165_v36  ;;  %v3189_v3 = vcombine.low %v5396_v56, %v3172_v9  ;;  %v3190_v11 = vcombine.high %v5396_v56, %v3172_v9 }
 0x723   : > { %v3037_v10 = vcombine.low %v3013_v29, %v3029_v18  ;;  %v3038_v16 = vcombine.high %v3013_v29, %v3029_v18  ;;  %v3053_v12 = vcombine.low %v3020_v17, %v3036_v55  ;;  %v3054_v63 = vcombine.high %v3020_v17, %v3036_v55 }
 0x724   : > { %v3181_v27 = vrot.slane %v3173_v13, %v4850_v52  ;;  %v3188_v28 = vrot.slane %v3174_v23, %v4850_v52  ;;  %v3197_v35 = vrot.slane %v3189_v3, %v4850_v52  ;;  %v3204_v58 = vrot.slane %v3190_v11, %v4850_v52 }
 0x725   : > { %v3045_v49 = vrot.slane %v3037_v10, %v4850_v52  ;;  %v3052_v4 = vrot.slane %v3038_v16, %v4850_v52  ;;  %v3061_v59 = vrot.slane %v3053_v12, %v4850_v52  ;;  %v3068_v56 = vrot.slane %v3054_v63, %v4850_v52  ;;  %v4174_v12 = vld [vmem:[#allocation8] sm:$0xff]  }
 0x726   : > { %v3413_v26 = vcombine.low %v3181_v27, %v3188_v28  ;;  %v3893_v29 = vcombine.high %v3181_v27, %v3188_v28  ;;  %v3429_v21 = vcombine.low %v3197_v35, %v3204_v58  ;;  %v3894_v17 = vcombine.high %v3197_v35, %v3204_v58  ;;  %4054 = vmatprep.subr.bf16.mxu0 %v4174_v12 }
 0x727   : > { %v3277_v5 = vcombine.low %v3045_v49, %v3052_v4  ;;  %v3889_v24 = vcombine.high %v3045_v49, %v3052_v4  ;;  %v3293_v48 = vcombine.low %v3061_v59, %v3068_v56  ;;  %v3890_v31 = vcombine.high %v3061_v59, %v3068_v56  ;;  %4055 = vmatpush3.bf16.msra.mxu0 %v4174_v12 }
 0x728   : > { %v3378_v34 = vcombine.high %v3352_v2, %v3360_v20  ;;  %v3394_v25 = vcombine.high %v3368_v1, %v3376_v41  ;;  %v3377_v57 = vcombine.low %v3352_v2, %v3360_v20  ;;  %v3393_v39 = vcombine.low %v3368_v1, %v3376_v41 }
 0x729   : > { %v3420_v32 = vrot.slane %v3413_v26, %v4843_v44  ;;  %v3428_v7 = vrot.slane %v3893_v29, %v4843_v44  ;;  %v3436_v33 = vrot.slane %v3429_v21, %v4843_v44  ;;  %v3444_v14 = vrot.slane %v3894_v17, %v4843_v44  ;;  %v4175_v26 = vld [vmem:[#allocation8 + $0x8] sm:$0xff]  }
 0x72a   : > { %v3392_v37 = vrot.slane %v3378_v34, %v4850_v52  ;;  %v3408_v6 = vrot.slane %v3394_v25, %v4850_v52  ;;  %v5451_v42 = vrot.slane %v3377_v57, %v4850_v52  ;;  %v5454_v8 = vrot.slane %v3393_v39, %v4850_v52  ;;  %4056 = vmatprep.subr.bf16.mxu0 %v4175_v26  ;;  %v4176_v57 = vld [vmem:[#allocation8 + $0x10] sm:$0xff]  }
 0x72b   : > { %v3445_v46 = vcombine.low %v3420_v32, %v3428_v7  ;;  %v3461_v45 = vcombine.low %v3436_v33, %v3444_v14  ;;  %v3216_v43 = vrot.slane %v3209_v50, %v4843_v44  ;;  %v3224_v30 = vrot.slane %v3887_v61, %v4843_v44  ;;  %4057 = vmatpush3.bf16.msra.mxu0 %v4175_v26 }
 0x72c   : > { %v3411_v40 = vcombine.low %v3392_v37, %v3408_v6  ;;  %v3410_v19 = vcombine.high %v5451_v42, %v5454_v8  ;;  %v3412_v51 = vcombine.high %v3392_v37, %v3408_v6  ;;  %v3232_v54 = vrot.slane %v3225_v22, %v4843_v44  ;;  %4058 = vmatprep.subr.bf16.mxu0 %v4176_v57 }
 0x72d   : > { %v5462_v15 = vrot.slane %v3445_v46, %v4850_v52  ;;  %v5465_v0 = vrot.slane %v3461_v45, %v4850_v52  ;;  %v3240_v47 = vrot.slane %v3888_v38, %v4843_v44  ;;  %v3241_v53 = vcombine.low %v3216_v43, %v3224_v30 }
 0x72e   : > { %3505 = vrot.lane.b32.xlu0 %v3411_v40, %s4477_s29  ;;  %3489 = vrot.lane.b32.xlu1 %v3410_v19, %s4478_s13  ;;  %v3446_v50 = vcombine.high %v3420_v32, %v3428_v7  ;;  %v3462_v61 = vcombine.high %v3436_v33, %v3444_v14  ;;  %v3242_v22 = vcombine.high %v3216_v43, %v3224_v30  ;;  %v3556_v3 = vadd.f32 1.0, %v5420_v60  ;;  %v3571_v7 = vpop.permute.xlu0 %3570  ;;  %v3573_v33 = vpop.permute.xlu1 %3572 }
 0x72f   : > { %v3478_v36 = vcombine.high %v5462_v15, %v5465_v0  ;;  %v5474_v9 = vrot.slane %v3241_v53, %v4850_v52  ;;  %v3257_v18 = vcombine.low %v3232_v54, %v3240_v47  ;;  %v3258_v38 = vcombine.high %v3232_v54, %v3240_v47  ;;  %4059 = vmatpush3.bf16.msra.mxu0 %v4176_v57 }
 0x730   : > { %v3460_v55 = vrot.slane %v3446_v50, %v4850_v52  ;;  %v3476_v62 = vrot.slane %v3462_v61, %v4850_v52  ;;  %v3256_v2 = vrot.slane %v3242_v22, %v4850_v52  ;;  %v3284_v20 = vrot.slane %v3277_v5, %v4843_v44  ;;  %v4261_v5 = vpop.eup %4260 }
 0x731   : > { %v5481_v1 = vrot.slane %v3257_v18, %v4850_v52  ;;  %v3272_v41 = vrot.slane %v3258_v38, %v4850_v52  ;;  %v3292_v13 = vrot.slane %v3889_v24, %v4843_v44  ;;  %v3300_v23 = vrot.slane %v3293_v48, %v4843_v44 }
 0x732   : > { %3521 = vrot.lane.b32.xlu0 %v3412_v51, %s4479_s15  ;;  %3491 = vrot.lane.b32.xlu1 %v3478_v36, %s4478_s13  ;;  %v3479_v11 = vcombine.low %v3460_v55, %v3476_v62  ;;  %v3480_v10 = vcombine.high %v3460_v55, %v3476_v62  ;;  %v3308_v16 = vrot.slane %v3890_v31, %v4843_v44  ;;  %4262 = vrcp.f32 %v3556_v3 }
 0x733   : > { %v3274_v63 = vcombine.high %v5474_v9, %v5481_v1  ;;  %v3275_v27 = vcombine.low %v3256_v2, %v3272_v41  ;;  %v3276_v28 = vcombine.high %v3256_v2, %v3272_v41  ;;  %v3309_v35 = vcombine.low %v3284_v20, %v3292_v13 }
 0x734   : > { %v3325_v58 = vcombine.low %v3300_v23, %v3308_v16  ;;  %v3310_v49 = vcombine.high %v3284_v20, %v3292_v13  ;;  %v3326_v4 = vcombine.high %v3300_v23, %v3308_v16  ;;  %v3409_v60 = vcombine.low %v5451_v42, %v5454_v8 }
 0x735   : > { %v3317_v59 = vrot.slane %v3309_v35, %v4850_v52  ;;  %v3477_v56 = vcombine.low %v5462_v15, %v5465_v0  ;;  %v3273_v44 = vcombine.low %v5474_v9, %v5481_v1  ;;  %v3557_v25 = vadd.f32 1.0, %v4261_v5 }
 0x736   : > { %3485 = vrot.lane.b32.xlu0 %v3274_v63, %s4478_s13  ;;  %3507 = vrot.lane.b32.xlu1 %v3479_v11, %s4477_s29  ;;  %v3333_v29 = vrot.slane %v3325_v58, %v4850_v52  ;;  %v3324_v21 = vrot.slane %v3310_v49, %v4850_v52  ;;  %v3340_v17 = vrot.slane %v3326_v4, %v4850_v52  ;;  %v4177_v52 = vld [vmem:[#allocation8 + $0x18] sm:$0xff]  }
 0x737   : > { %4264 = vrcp.f32 %v3557_v25  ;;  %4060 = vmatprep.subr.bf16.mxu0 %v4177_v52 }
 0x738   : > { %v3342_v24 = vcombine.high %v3317_v59, %v3333_v29  ;;  %v3343_v48 = vcombine.low %v3324_v21, %v3340_v17  ;;  %v3344_v31 = vcombine.high %v3324_v21, %v3340_v17  ;;  %v3341_v34 = vcombine.low %v3317_v59, %v3333_v29  ;;  %4061 = vmatpush3.bf16.msra.mxu0 %v4177_v52 }
 0x73a   : > { %3501 = vrot.lane.b32.xlu0 %v3275_v27, %s4477_s29  ;;  %3523 = vrot.lane.b32.xlu1 %v3480_v10, %s4479_s15 }
 0x73c   : > { %v4263_v39 = vpop.eup %4262 }
 0x73e   : > { %3517 = vrot.lane.b32.xlu0 %v3276_v28, %s4479_s15  ;;  %3487 = vrot.lane.b32.xlu1 %v3342_v24, %s4478_s13 }
 0x741   : > { %v4265_v32 = vpop.eup %4264 }
 0x742   : > { %3574 = vrot.lane.b32.xlu0 %v4263_v39, %s4474_s22  ;;  %3503 = vrot.lane.b32.xlu1 %v3343_v48, %s4477_s29 }
 0x746   : > { %3519 = vrot.lane.b32.xlu1 %v3344_v31, %s4479_s15 }
 0x74a   : > { %3576 = vrot.lane.b32.xlu1 %v4265_v32, %s4474_s22 }
 0x7a0   : > { %v3490_v14 = vpop.permute.xlu1 %3489  ;;  %v3506_v37 = vpop.permute.xlu0 %3505 }
 0x7a1   : > { %v3531_v47 = vsel %vm2267_vm1, %v3409_v60, %v3490_v14 }
 0x7a2   : > { %v3535_v38 = vsel %vm2532_vm2, %v3531_v47, %v3506_v37 }
 0x7a4   : > { %v3492_v6 = vpop.permute.xlu1 %3491  ;;  %v3522_v42 = vpop.permute.xlu0 %3521 }
 0x7a5   : > { %v3532_v22 = vsel %vm2267_vm1, %v3477_v56, %v3492_v6  ;;  %v3540_v62 = vsel %vm3537_vm3, %v3535_v38, %v3522_v42 }
 0x7a8   : > { %v3508_v8 = vpop.permute.xlu1 %3507  ;;  %v3486_v46 = vpop.permute.xlu0 %3485 }
 0x7a9   : > { %v3529_v51 = vsel %vm2267_vm1, %v3273_v44, %v3486_v46  ;;  %v3536_v55 = vsel %vm2532_vm2, %v3532_v22, %v3508_v8 }
 0x7ac   : > { %v3524_v45 = vpop.permute.xlu1 %3523  ;;  %v3502_v43 = vpop.permute.xlu0 %3501 }
 0x7ad   : > { %v3533_v54 = vsel %vm2532_vm2, %v3529_v51, %v3502_v43  ;;  %v3541_v20 = vsel %vm3537_vm3, %v3536_v55, %v3524_v45 }
 0x7b0   : > { %v3488_v30 = vpop.permute.xlu1 %3487  ;;  %v3518_v40 = vpop.permute.xlu0 %3517 }
 0x7b1   : > { %v3530_v15 = vsel %vm2267_vm1, %v3341_v34, %v3488_v30  ;;  %v3538_v0 = vsel %vm3537_vm3, %v3533_v54, %v3518_v40 }
 0x7b2   : > { %v3582_v36 = vmul.f32 %v3571_v7, %v3538_v0 }
 0x7b4   : > { %v3504_v19 = vpop.permute.xlu1 %3503  ;;  %v3575_v9 = vpop.permute.xlu0 %3574 }
 0x7b5   : > { %v3534_v53 = vsel %vm2532_vm2, %v3530_v15, %v3504_v19  ;;  %v3584_v41 = vmul.f32 %v3575_v9, %v3540_v62 }
 0x7b8   : > { %v3520_v50 = vpop.permute.xlu1 %3519 }
 0x7b9   : > { %v3539_v61 = vsel %vm3537_vm3, %v3534_v53, %v3520_v50 }
 0x7ba   : > { %v3583_v18 = vmul.f32 %v3573_v33, %v3539_v61 }
 0x7bc   : > { %v3586_v2 = vpack.c.bf16 %v3583_v18, %v3582_v36  ;;  %v3577_v1 = vpop.permute.xlu1 %3576 }
 0x7bd   : > { %v3585_v13 = vmul.f32 %v3577_v1, %v3541_v20 }
 0x7be   : > { %4062 = vmatprep.mubr.msk.bf16.mxu0 %vm412_vm0, %v3586_v2 }
 0x7bf   : > { %v3587_v23 = vpack.c.bf16 %v3585_v13, %v3584_v41 }
 0x7c1   : > { %4063 = vmatmul.mubr.msk.bf16.vlgmr.msra.gmra.mrb[16].mxu0 %vm412_vm0, %v3587_v23 }
 0x894   : > { %v4064_v3 = vpop.f32.mrb[16].mxu0 }
 0x895   : > { %3677 = vst.msk [vmem:[%s403_s11 + $0x10] sm:$0xff] %vm412_vm0, %v4064_v3  ;;  %v3660_v11 = vpop.f32.mrb[17].mxu0 }
 0x896   : > { %3675 = vst.msk [vmem:[%s403_s11] sm:$0xff] %vm412_vm0, %v3660_v11  ;;  %v4065_v10 = vpop.f32.mrb[18].mxu0 }
 0x897   : > { %3678 = vst.msk [vmem:[%s403_s11 + $0x18] sm:$0xff] %vm412_vm0, %v4065_v10  ;;  %v3663_v16 = vpop.f32.mrb[19].mxu0 }
 0x898   : > { %3676 = vst.msk [vmem:[%s403_s11 + $0x8] sm:$0xff] %vm412_vm0, %v3663_v16 }
 0x899   : > { %4395 = shalt.err (!%p4392_p9)
}
 0x89a   : > { %s4396_s22 = scalar_lea.hbm %s5531_s14, 512  ;;  %s4400_s19 = scalar_lea.hbm %s5586_s8, 1024 }
 0x89b   : > { %p4397_p0 = scmp.ne.s32.totalorder %s5531_s14, %s4396_s22  ;;  %p4401_p2 = scmp.lt.u32.totalorder %s5531_s14, %s5586_s8 }
 0x89c   : > { %p4402_p12 = scmp.lt.u32.totalorder %s4400_s19, %s4396_s22  ;;  %p4404_p13 = scmp.lt.u32.totalorder %s4396_s22, %s5531_s14 }
 0x89d   : > { %p4398_p8 = pnand %p4397_p0, %p5623_p6 }
 0x89e   : > { %p4403_p1 = por %p4402_p12, %p4401_p2 }
 0x89f   : > { %p4399_p11 = pneg %p4398_p8 }
 0x8a0   : > { %p4405_p10 = por %p4404_p13, %p4403_p1 }
 0x8a2   : > { %p4406_p4 = pnand %p4405_p10, %p4399_p11 }
 0x8a4   : > { %4409 = shalt.err (!%p4406_p4)
}
 0x8a5   : > { %s4481_s13 = smov 128   ;;  %s4482_s15 = smov 8  }
 0x8a6   : > { %4086 = dma.vmem_to_hbm [thread:$0]  (%p5623_p6), %s5525_s17, 512, %s5531_s14, %s3680_s9, %s4481_s13, %s4481_s13, %s4482_s15  }
 0x8a7 PF: > { %s3708_s11 = sand.u32 1, %s4448_s27   ;;  %p5624_p7 = scmp.ne.s32.totalorder %s5602_s12, 0 }
 0x8a8   : > { %p5625_p3 = scmp.ge.s32.totalorder %s4460_s30, 2  ;;  %s3709_s26 = scalar_lea.sflag [#allocation4], %s3708_s11 }
 0x8aa   : > { %p4103_p5 = pnand %p5625_p3, %p5624_p7 }
 0x8ac   : > { %4443 = dma.done.wait (!%p4103_p5), %s3709_s26, 512  }
 0x8ad   : > { %4445 = vsyncadd (!%p4103_p5), %s3709_s26, 4294966784  ;;  %s5626_s30 = sld [smem:[#allocation17_spill]]  ;;  %s5627_s23 = sld [smem:[#allocation16_spill]] }
 0x8ae   : > { %s5628_s29 = sld [smem:[#allocation18_spill]]  ;;  %s5629_s27 = smov %s4452_s28 }
 0x8b3   : > { %p25_p9 = scmp.ge.s32.totalorder %s5626_s30, 4   ;;  %s5630_s28 = smov %s5627_s23 }
 0x8b5   :  { %27 = sbr.rel (!%p25_p9) target bundleno = 12 (0xc), region = 121 }
 0x8bc   :  { %3714 = vsyncpa [#allocation3], 1 }
 0x8bd   :  { %3716 = vsyncpa [#allocation3 + $0x1], 1 }
 0x8be   :  { %3717 = vsyncpa [#allocation6], 1 }
 0x8bf   :  { %3719 = vsyncpa [#allocation6 + $0x1], 1 }
 0x8c0   :  { %3720 = vsyncpa [#allocation9], 1 }
 0x8c1   :  { %3721 = vsyncpa [#allocation4], 1 }
 0x8c2   :  { %3723 = vsyncpa [#allocation4 + $0x1], 1 }

</bundles_post_ra>
